<compile_context>
chip_gen: v7x
topology: tpu7x:2x2x1
jax: 0.10.0
libtpu: 0.0.40
codegen_flags: <defaults>
</compile_context>

<pallas_src>
import functools

import jax
import jax.numpy as jnp
from jax import lax
from jax.experimental import pallas as pl
from jax.experimental.pallas import tpu as pltpu


def _round_up(x, m):
    return ((x + m - 1) // m) * m


def _ques_embedding_kernel(
    x_ref,      # (T, Bb, D_in)  time-major question tokens (batch tile), f32
    wih0_ref,   # (D_in, 4H)     layer-0 input->gates (transposed), compute dtype
    b0_ref,     # (1, 4H)        layer-0 bias (b_ih + b_hh), f32
    wbig_ref,   # (2H, 8H)       skewed fused recurrent weight, compute dtype
    b1_ref,     # (1, 4H)        layer-1 bias (b_ih + b_hh), f32
    wff_ref,    # (4H, O_pad)    final Linear weight (transposed, lane-padded)
    bff_ref,    # (1, O_pad)     final Linear bias (lane-padded), f32
    out_ref,    # (Bb, O_pad)    ques_embedding (batch tile), f32
    xproj_ref,  # (T*Bb, 4H)     f32 scratch: hoisted layer-0 input projection
):
    T, B, D_in = x_ref.shape
    H4 = b0_ref.shape[1]
    H = H4 // 4
    cdt = wbig_ref.dtype            # bf16 (default) or f32 MXU operands

    wbig = wbig_ref[...]

    # Hoisted layer-0 input projection: one tall 2-D matmul over all T*B rows
    # (bias folded in).  Only the skewed recurrent matmul stays in the loop.
    x2 = x_ref[...].reshape(T * B, D_in).astype(cdt)
    xproj_ref[...] = (
        jnp.dot(x2, wih0_ref[...], preferred_element_type=jnp.float32)
        + b0_ref[...]
    )

    # Pre-broadcast layer-1 bias once (JAX does not CSE broadcast_in_dim).
    b1b = jnp.broadcast_to(b1_ref[...], (B, H4))

    def lstm_update(gates_f32, c_prev):
        # PyTorch gate order [i, f, g, o].  Activations are issued full-width
        # (one 128-lane block per transcendental) and sliced AFTERWARDS, so the
        # EUP never sees lane-masked quarter-vreg work.
        sg = jax.nn.sigmoid(gates_f32)
        th = jnp.tanh(gates_f32)
        i = sg[:, 0 * H:1 * H]
        f = sg[:, 1 * H:2 * H]
        g = th[:, 2 * H:3 * H]
        o = sg[:, 3 * H:4 * H]
        c = f * c_prev + i * g
        h = o * jnp.tanh(c)
        return h, c

    zeros = jnp.zeros((B, H), jnp.float32)

    # ---- peeled prologue: layer-0 step t=0 (h0_{-1}=c0_{-1}=0, no matmul) ----
    g0 = xproj_ref[pl.ds(0, B), :]
    h0, c0 = lstm_update(g0, zeros)

    # ---- skewed main loop: iteration s does layer-0 @ t=s and layer-1 @ t=s-1
    def step(s, carry):
        # carry = (h0_{s-1}, c0_{s-1}, h1_{s-2}, c1_{s-2})
        h0, c0, h1, c1 = carry
        hh = jnp.concatenate([h0, h1], axis=1).astype(cdt)          # (B, 2H)
        gbig = jnp.dot(hh, wbig, preferred_element_type=jnp.float32)  # (B, 8H)
        xt = xproj_ref[pl.ds(pl.multiple_of(s * B, 8), B), :]
        g0 = gbig[:, :H4] + xt          # layer-0 gates at time s
        g1 = gbig[:, H4:] + b1b         # layer-1 gates at time s-1
        h0n, c0n = lstm_update(g0, c0)
        h1n, c1n = lstm_update(g1, c1)
        return h0n, c0n, h1n, c1n

    # Cap unroll to guard vreg pressure at large Bb / long production T.
    unroll = max(1, min(T - 1, 8))
    h0, c0, h1, c1 = lax.fori_loop(1, T, step, (h0, c0, zeros, zeros),
                                   unroll=unroll)
    # carry now holds h0_{T-1}, c0_{T-1}, h1_{T-2}, c1_{T-2}

    # ---- peeled epilogue: layer-1 step t=T-1 ----
    hh = jnp.concatenate([h0, h1], axis=1).astype(cdt)
    g1 = jnp.dot(hh, wbig[:, H4:], preferred_element_type=jnp.float32) + b1b
    h1, c1 = lstm_update(g1, c1)

    # ---- fflayer: tanh(Linear([h0|c0|h1|c1])) — single K=4H matmul ----
    feat = jnp.concatenate([h0, c0, h1, c1], axis=1).astype(cdt)     # (B, 4H)
    acc = jnp.dot(feat, wff_ref[...], preferred_element_type=jnp.float32)
    out_ref[...] = jnp.tanh(acc + bff_ref[...])


def prepare_params(params, output_size, compute_dtype=jnp.bfloat16):
    """One-time repack of PyTorch-layout LSTM/Linear params into kernel layout.

    Transposes, bias combining, skewed weight stacking, FF lane-padding and the
    MXU-operand dtype cast are all hoisted here (never paid per forward call).
    Biases stay f32; matmul accumulation is always f32 in-kernel.
    """
    (w_ih0, w_hh0, b_ih0, b_hh0,
     w_ih1, w_hh1, b_ih1, b_hh1,
     w_ff, b_ff) = params
    H = w_hh0.shape[1]
    O_pad = _round_up(output_size, 128)

    wih0_t = jnp.transpose(w_ih0).astype(compute_dtype)             # (D_in, 4H)
    b0 = (b_ih0 + b_hh0).reshape(1, 4 * H).astype(jnp.float32)
    # Skewed fused recurrent weight: [h0_{s-1} | h1_{s-2}] @ wbig yields
    # [layer-0 gates at s | layer-1 gates at s-1].
    zblk = jnp.zeros((H, 4 * H), jnp.float32)
    wbig = jnp.concatenate(
        [jnp.concatenate([jnp.transpose(w_hh0), jnp.transpose(w_ih1)], axis=1),
         jnp.concatenate([zblk, jnp.transpose(w_hh1)], axis=1)],
        axis=0).astype(compute_dtype)                                # (2H, 8H)
    b1 = (b_ih1 + b_hh1).reshape(1, 4 * H).astype(jnp.float32)
    wff_t = jnp.pad(jnp.transpose(w_ff),
                    ((0, 0), (0, O_pad - output_size))).astype(compute_dtype)
    bff = jnp.pad(b_ff, (0, O_pad - output_size)).reshape(1, O_pad)
    bff = bff.astype(jnp.float32)
    return (wih0_t, b0, wbig, b1, wff_t, bff)


@functools.partial(jax.jit, static_argnums=(2,))
def ques_embedding_forward_time_major(x_tm, prepped, output_size):
    """Preferred entry: x_tm is (T, B, D_in) float32, time-major (no HBM transpose)."""
    T, B, D_in = x_tm.shape
    wih0_t, b0, wbig, b1, wff_t, bff = prepped
    H4 = b0.shape[1]
    H = H4 // 4
    O_pad = wff_t.shape[1]

    # Adaptive batch tile: padding stays <= 7 rows; one block unless the padded
    # batch exceeds 128 (don't split a latency-bound recurrence across cores).
    B8 = _round_up(max(B, 8), 8)
    n_blocks = (B8 + 127) // 128
    bb = _round_up(-(-B8 // n_blocks), 8)
    B_pad = bb * n_blocks
    if B_pad != B:
        x_tm = jnp.pad(x_tm, ((0, 0), (0, B_pad - B), (0, 0)))

    out = pl.pallas_call(
        _ques_embedding_kernel,
        out_shape=jax.ShapeDtypeStruct((B_pad, O_pad), jnp.float32),
        grid=(B_pad // bb,),
        in_specs=[
            pl.BlockSpec((T, bb, D_in), lambda i: (0, i, 0)),   # x (batch-tiled)
            pl.BlockSpec((D_in, 4 * H), lambda i: (0, 0)),      # wih0
            pl.BlockSpec((1, 4 * H), lambda i: (0, 0)),         # b0
            pl.BlockSpec((2 * H, 8 * H), lambda i: (0, 0)),     # wbig (skewed)
            pl.BlockSpec((1, 4 * H), lambda i: (0, 0)),         # b1
            pl.BlockSpec((4 * H, O_pad), lambda i: (0, 0)),     # wff
            pl.BlockSpec((1, O_pad), lambda i: (0, 0)),         # bff
        ],
        out_specs=pl.BlockSpec((bb, O_pad), lambda i: (i, 0)),
        scratch_shapes=[pltpu.VMEM((T * bb, 4 * H), jnp.float32)],
        compiler_params=pltpu.CompilerParams(
            dimension_semantics=("parallel",),
        ),
    )(x_tm, wih0_t, b0, wbig, b1, wff_t, bff)

    return out[:B, :output_size]


@functools.partial(jax.jit, static_argnums=(2,))
def ques_embedding_forward(ques, prepped, output_size):
    """ques: (B, T, D_in) float32, batch_first like the PyTorch module.

    Compatibility shim over the time-major entry point.
    """
    # TODO(synk): production callers should provide time-major input upstream
    # and call ques_embedding_forward_time_major directly (saves an HBM pass).
    x_tm = jnp.transpose(ques, (1, 0, 2))
    return ques_embedding_forward_time_major(x_tm, prepped, output_size)


def init_params(key, input_size, hidden_size, output_size):
    """Deterministic synthetic params matching nn.LSTM(2 layers) + nn.Linear shapes."""
    ks = jax.random.split(key, 10)
    H = hidden_size

    def u(k, shape, scale=0.1):
        return jax.random.uniform(k, shape, jnp.float32, -scale, scale)

    w_ih0 = u(ks[0], (4 * H, input_size))
    w_hh0 = u(ks[1], (4 * H, H))
    b_ih0 = u(ks[2], (4 * H,))
    b_hh0 = u(ks[3], (4 * H,))
    w_ih1 = u(ks[4], (4 * H, H))
    w_hh1 = u(ks[5], (4 * H, H))
    b_ih1 = u(ks[6], (4 * H,))
    b_hh1 = u(ks[7], (4 * H,))
    w_ff = u(ks[8], (output_size, 4 * H))   # Linear(2 * num_layers * H, output_size)
    b_ff = u(ks[9], (output_size,))
    return (w_ih0, w_hh0, b_ih0, b_hh0,
            w_ih1, w_hh1, b_ih1, b_hh1,
            w_ff, b_ff)


def ques_embedding_reference(ques, params):
    """Pure-JAX reference matching the PyTorch forward (sanity check)."""
    (w_ih0, w_hh0, b_ih0, b_hh0,
     w_ih1, w_hh1, b_ih1, b_hh1,
     w_ff, b_ff) = params
    B, T, _ = ques.shape
    H = w_hh0.shape[1]

    def cell(x_t, h, c, w_ih, w_hh, b_ih, b_hh):
        g = x_t @ w_ih.T + h @ w_hh.T + b_ih + b_hh
        i = jax.nn.sigmoid(g[:, :H])
        f = jax.nn.sigmoid(g[:, H:2 * H])
        gg = jnp.tanh(g[:, 2 * H:3 * H])
        o = jax.nn.sigmoid(g[:, 3 * H:])
        c = f * c + i * gg
        h = o * jnp.tanh(c)
        return h, c

    h0 = c0 = h1 = c1 = jnp.zeros((B, H), jnp.float32)
    for t in range(T):
        x_t = ques[:, t, :]
        h0, c0 = cell(x_t, h0, c0, w_ih0, w_hh0, b_ih0, b_hh0)
        h1, c1 = cell(h0, h1, c1, w_ih1, w_hh1, b_ih1, b_hh1)
    feat = jnp.concatenate([h0, c0, h1, c1], axis=1)
    return jnp.tanh(feat @ w_ff.T + b_ff)


if __name__ == "__main__":
    # Small shapes consistent with the module's forward: (B, T, input_size)
    B, T = 2, 8
    input_size, hidden_size, output_size = 32, 32, 64

    key = jax.random.PRNGKey(0)
    k_x, k_p = jax.random.split(key)
    ques = jax.random.normal(k_x, (B, T, input_size), jnp.float32)
    params = init_params(k_p, input_size, hidden_size, output_size)

    ref = ques_embedding_reference(ques, params)

    # f32 MXU-operand path: strict semantic check against the pure-JAX reference.
    prepped_f32 = prepare_params(params, output_size, compute_dtype=jnp.float32)
    out_f32 = jax.block_until_ready(
        ques_embedding_forward(ques, prepped_f32, output_size))
    assert out_f32.shape == (B, output_size), out_f32.shape
    err_f32 = float(jnp.max(jnp.abs(out_f32 - ref)))
    assert err_f32 < 1e-2, f"f32 max abs err {err_f32}"

    # bf16 MXU-operand path (default perf mode on v6e/v7x): f32 accumulation &
    # f32 elementwise; looser tolerance since the LSTM compounds bf16 rounding
    # over T timesteps.
    prepped_bf16 = prepare_params(params, output_size)  # compute_dtype=bf16
    out_bf16 = jax.block_until_ready(
        ques_embedding_forward(ques, prepped_bf16, output_size))
    assert out_bf16.shape == (B, output_size), out_bf16.shape
    err_bf16 = float(jnp.max(jnp.abs(out_bf16 - ref)))
    assert err_bf16 < 5e-2, f"bf16 max abs err {err_bf16}"

    print("KERNEL_OK")
</pallas_src>

<mosaic_0001>
module attributes {stable_mosaic.version = 11 : i64} {
  func.func @_ques_embedding_kernel(%arg0: i32, %arg1: memref<8x8x32xf32, #tpu.memory_space<vmem>>, %arg2: memref<32x128xf32, #tpu.memory_space<vmem>>, %arg3: memref<1x128xf32, #tpu.memory_space<vmem>>, %arg4: memref<64x256xf32, #tpu.memory_space<vmem>>, %arg5: memref<1x128xf32, #tpu.memory_space<vmem>>, %arg6: memref<128x128xf32, #tpu.memory_space<vmem>>, %arg7: memref<1x128xf32, #tpu.memory_space<vmem>>, %arg8: memref<8x128xf32, #tpu.memory_space<vmem>>, %arg9: memref<64x128xf32, #tpu.memory_space<vmem>>) attributes {dimension_semantics = [#tpu.dimension_semantics<parallel>], iteration_bounds = array<i64: 1>, scalar_prefetch = 0 : i64, scratch_operands = 1 : i64, tpu.core_type = #tpu.core_type<tc>, window_params = [{transform_indices = @transform_0, window_bounds = array<i64: 8, 8, 32>}, {pipeline_mode = #tpu.pipeline_mode<synchronous>, transform_indices = @transform_1, window_bounds = array<i64: 32, 128>}, {pipeline_mode = #tpu.pipeline_mode<synchronous>, transform_indices = @transform_2, window_bounds = array<i64: 1, 128>}, {pipeline_mode = #tpu.pipeline_mode<synchronous>, transform_indices = @transform_3, window_bounds = array<i64: 64, 256>}, {pipeline_mode = #tpu.pipeline_mode<synchronous>, transform_indices = @transform_4, window_bounds = array<i64: 1, 128>}, {pipeline_mode = #tpu.pipeline_mode<synchronous>, transform_indices = @transform_5, window_bounds = array<i64: 128, 128>}, {pipeline_mode = #tpu.pipeline_mode<synchronous>, transform_indices = @transform_6, window_bounds = array<i64: 1, 128>}, {transform_indices = @transform_7, window_bounds = array<i64: 8, 128>}]} {
    %c0 = arith.constant 0 : index
    %c0_0 = arith.constant 0 : index
    %0 = vector.load %arg4[%c0, %c0_0] : memref<64x256xf32, #tpu.memory_space<vmem>>, vector<64x256xf32>
    %c0_1 = arith.constant 0 : index
    %c0_2 = arith.constant 0 : index
    %c0_3 = arith.constant 0 : index
    %1 = vector.load %arg1[%c0_1, %c0_2, %c0_3] : memref<8x8x32xf32, #tpu.memory_space<vmem>>, vector<8x8x32xf32>
    %2 = vector.shape_cast %1 : vector<8x8x32xf32> to vector<64x32xf32>
    %c0_4 = arith.constant 0 : index
    %c0_5 = arith.constant 0 : index
    %3 = vector.load %arg2[%c0_4, %c0_5] : memref<32x128xf32, #tpu.memory_space<vmem>>, vector<32x128xf32>
    %cst = arith.constant dense<0.000000e+00> : vector<64x128xf32>
    %4 = tpu.matmul %2, %3, %cst {dimension_numbers = #tpu.dot_dimension_numbers<[1], [0], [0], [1], [0, 0, 1, 1], [], []>} : vector<64x32xf32>, vector<32x128xf32>, vector<64x128xf32> -> vector<64x128xf32>
    %c0_6 = arith.constant 0 : index
    %c0_7 = arith.constant 0 : index
    %5 = vector.load %arg3[%c0_6, %c0_7] : memref<1x128xf32, #tpu.memory_space<vmem>>, vector<1x128xf32>
    %6 = vector.broadcast %5 : vector<1x128xf32> to vector<64x128xf32>
    %7 = arith.addf %4, %6 : vector<64x128xf32>
    %c0_8 = arith.constant 0 : index
    %c0_9 = arith.constant 0 : index
    %8 = vector.load %arg9[%c0_8, %c0_9] : memref<64x128xf32, #tpu.memory_space<vmem>>, vector<64x128xf32>
    tpu.vector_store %arg9[%c0_8, %c0_9], %7 {strides = array<i32>} : memref<64x128xf32, #tpu.memory_space<vmem>>, vector<64x128xf32>,
    %c0_10 = arith.constant 0 : index
    %c0_11 = arith.constant 0 : index
    %9 = vector.load %arg5[%c0_10, %c0_11] : memref<1x128xf32, #tpu.memory_space<vmem>>, vector<1x128xf32>
    %10 = vector.shape_cast %9 : vector<1x128xf32> to vector<1x128xf32>
    %11 = vector.broadcast %10 : vector<1x128xf32> to vector<8x128xf32>
    %cst_12 = arith.constant 0.000000e+00 : f32
    %12 = vector.broadcast %cst_12 : f32 to vector<8x32xf32>
    %c0_13 = arith.constant 0 : index
    %c0_14 = arith.constant 0 : index
    %13 = vector.load %arg9[%c0_13, %c0_14] : memref<64x128xf32, #tpu.memory_space<vmem>>, vector<8x128xf32>
    %14 = arith.negf %13 : vector<8x128xf32>
    %15 = math.exp %14 : vector<8x128xf32>
    %cst_15 = arith.constant 1.000000e+00 : f32
    %16 = vector.broadcast %cst_15 : f32 to vector<8x128xf32>
    %17 = arith.addf %16, %15 : vector<8x128xf32>
    %18 = arith.divf %16, %17 : vector<8x128xf32>
    %19 = math.tanh %13 : vector<8x128xf32>
    %20 = vector.extract_strided_slice %18 {offsets = [0, 0], sizes = [8, 32], strides = [1, 1]} : vector<8x128xf32> to vector<8x32xf32>
    %21 = vector.extract_strided_slice %18 {offsets = [0, 32], sizes = [8, 32], strides = [1, 1]} : vector<8x128xf32> to vector<8x32xf32>
    %22 = vector.extract_strided_slice %19 {offsets = [0, 64], sizes = [8, 32], strides = [1, 1]} : vector<8x128xf32> to vector<8x32xf32>
    %23 = vector.extract_strided_slice %18 {offsets = [0, 96], sizes = [8, 32], strides = [1, 1]} : vector<8x128xf32> to vector<8x32xf32>
    %24 = arith.mulf %21, %12 : vector<8x32xf32>
    %25 = arith.mulf %20, %22 : vector<8x32xf32>
    %26 = arith.addf %24, %25 : vector<8x32xf32>
    %27 = math.tanh %26 : vector<8x32xf32>
    %28 = arith.mulf %23, %27 : vector<8x32xf32>
    %c1_i32 = arith.constant 1 : i32
    %29 = tpu.concatenate %28, %12 in 1 : vector<8x32xf32>, vector<8x32xf32> -> vector<8x64xf32>
    %cst_16 = arith.constant dense<0.000000e+00> : vector<8x256xf32>
    %30 = tpu.matmul %29, %0, %cst_16 {dimension_numbers = #tpu.dot_dimension_numbers<[1], [0], [0], [1], [0, 0, 1, 1], [], []>} : vector<8x64xf32>, vector<64x256xf32>, vector<8x256xf32> -> vector<8x256xf32>
    %c8_i32 = arith.constant 8 : i32
    %31 = arith.muli %c1_i32, %c8_i32 : i32
    %32 = tpu.assume_multiple %31, 8 : i32
    %33 = arith.index_cast %32 : i32 to index
    %c0_17 = arith.constant 0 : index
    %34 = vector.load %arg9[%33, %c0_17] : memref<64x128xf32, #tpu.memory_space<vmem>>, vector<8x128xf32>
    %35 = vector.extract_strided_slice %30 {offsets = [0, 0], sizes = [8, 128], strides = [1, 1]} : vector<8x256xf32> to vector<8x128xf32>
    %36 = arith.addf %35, %34 : vector<8x128xf32>
    %37 = vector.extract_strided_slice %30 {offsets = [0, 128], sizes = [8, 128], strides = [1, 1]} : vector<8x256xf32> to vector<8x128xf32>
    %38 = arith.addf %37, %11 : vector<8x128xf32>
    %39 = arith.negf %36 : vector<8x128xf32>
    %40 = math.exp %39 : vector<8x128xf32>
    %cst_18 = arith.constant 1.000000e+00 : f32
    %41 = vector.broadcast %cst_18 : f32 to vector<8x128xf32>
    %42 = arith.addf %41, %40 : vector<8x128xf32>
    %43 = arith.divf %41, %42 : vector<8x128xf32>
    %44 = math.tanh %36 : vector<8x128xf32>
    %45 = vector.extract_strided_slice %43 {offsets = [0, 0], sizes = [8, 32], strides = [1, 1]} : vector<8x128xf32> to vector<8x32xf32>
    %46 = vector.extract_strided_slice %43 {offsets = [0, 32], sizes = [8, 32], strides = [1, 1]} : vector<8x128xf32> to vector<8x32xf32>
    %47 = vector.extract_strided_slice %44 {offsets = [0, 64], sizes = [8, 32], strides = [1, 1]} : vector<8x128xf32> to vector<8x32xf32>
    %48 = vector.extract_strided_slice %43 {offsets = [0, 96], sizes = [8, 32], strides = [1, 1]} : vector<8x128xf32> to vector<8x32xf32>
    %49 = arith.mulf %46, %26 : vector<8x32xf32>
    %50 = arith.mulf %45, %47 : vector<8x32xf32>
    %51 = arith.addf %49, %50 : vector<8x32xf32>
    %52 = math.tanh %51 : vector<8x32xf32>
    %53 = arith.mulf %48, %52 : vector<8x32xf32>
    %54 = arith.negf %38 : vector<8x128xf32>
    %55 = math.exp %54 : vector<8x128xf32>
    %cst_19 = arith.constant 1.000000e+00 : f32
    %56 = vector.broadcast %cst_19 : f32 to vector<8x128xf32>
    %57 = arith.addf %56, %55 : vector<8x128xf32>
    %58 = arith.divf %56, %57 : vector<8x128xf32>
    %59 = math.tanh %38 : vector<8x128xf32>
    %60 = vector.extract_strided_slice %58 {offsets = [0, 0], sizes = [8, 32], strides = [1, 1]} : vector<8x128xf32> to vector<8x32xf32>
    %61 = vector.extract_strided_slice %58 {offsets = [0, 32], sizes = [8, 32], strides = [1, 1]} : vector<8x128xf32> to vector<8x32xf32>
    %62 = vector.extract_strided_slice %59 {offsets = [0, 64], sizes = [8, 32], strides = [1, 1]} : vector<8x128xf32> to vector<8x32xf32>
    %63 = vector.extract_strided_slice %58 {offsets = [0, 96], sizes = [8, 32], strides = [1, 1]} : vector<8x128xf32> to vector<8x32xf32>
    %64 = arith.mulf %61, %12 : vector<8x32xf32>
    %65 = arith.mulf %60, %62 : vector<8x32xf32>
    %66 = arith.addf %64, %65 : vector<8x32xf32>
    %67 = math.tanh %66 : vector<8x32xf32>
    %68 = arith.mulf %63, %67 : vector<8x32xf32>
    %c2_i32 = arith.constant 2 : i32
    %69 = tpu.concatenate %53, %68 in 1 : vector<8x32xf32>, vector<8x32xf32> -> vector<8x64xf32>
    %cst_20 = arith.constant dense<0.000000e+00> : vector<8x256xf32>
    %70 = tpu.matmul %69, %0, %cst_20 {dimension_numbers = #tpu.dot_dimension_numbers<[1], [0], [0], [1], [0, 0, 1, 1], [], []>} : vector<8x64xf32>, vector<64x256xf32>, vector<8x256xf32> -> vector<8x256xf32>
    %c8_i32_21 = arith.constant 8 : i32
    %71 = arith.muli %c2_i32, %c8_i32_21 : i32
    %72 = tpu.assume_multiple %71, 8 : i32
    %73 = arith.index_cast %72 : i32 to index
    %c0_22 = arith.constant 0 : index
    %74 = vector.load %arg9[%73, %c0_22] : memref<64x128xf32, #tpu.memory_space<vmem>>, vector<8x128xf32>
    %75 = vector.extract_strided_slice %70 {offsets = [0, 0], sizes = [8, 128], strides = [1, 1]} : vector<8x256xf32> to vector<8x128xf32>
    %76 = arith.addf %75, %74 : vector<8x128xf32>
    %77 = vector.extract_strided_slice %70 {offsets = [0, 128], sizes = [8, 128], strides = [1, 1]} : vector<8x256xf32> to vector<8x128xf32>
    %78 = arith.addf %77, %11 : vector<8x128xf32>
    %79 = arith.negf %76 : vector<8x128xf32>
    %80 = math.exp %79 : vector<8x128xf32>
    %cst_23 = arith.constant 1.000000e+00 : f32
    %81 = vector.broadcast %cst_23 : f32 to vector<8x128xf32>
    %82 = arith.addf %81, %80 : vector<8x128xf32>
    %83 = arith.divf %81, %82 : vector<8x128xf32>
    %84 = math.tanh %76 : vector<8x128xf32>
    %85 = vector.extract_strided_slice %83 {offsets = [0, 0], sizes = [8, 32], strides = [1, 1]} : vector<8x128xf32> to vector<8x32xf32>
    %86 = vector.extract_strided_slice %83 {offsets = [0, 32], sizes = [8, 32], strides = [1, 1]} : vector<8x128xf32> to vector<8x32xf32>
    %87 = vector.extract_strided_slice %84 {offsets = [0, 64], sizes = [8, 32], strides = [1, 1]} : vector<8x128xf32> to vector<8x32xf32>
    %88 = vector.extract_strided_slice %83 {offsets = [0, 96], sizes = [8, 32], strides = [1, 1]} : vector<8x128xf32> to vector<8x32xf32>
    %89 = arith.mulf %86, %51 : vector<8x32xf32>
    %90 = arith.mulf %85, %87 : vector<8x32xf32>
    %91 = arith.addf %89, %90 : vector<8x32xf32>
    %92 = math.tanh %91 : vector<8x32xf32>
    %93 = arith.mulf %88, %92 : vector<8x32xf32>
    %94 = arith.negf %78 : vector<8x128xf32>
    %95 = math.exp %94 : vector<8x128xf32>
    %cst_24 = arith.constant 1.000000e+00 : f32
    %96 = vector.broadcast %cst_24 : f32 to vector<8x128xf32>
    %97 = arith.addf %96, %95 : vector<8x128xf32>
    %98 = arith.divf %96, %97 : vector<8x128xf32>
    %99 = math.tanh %78 : vector<8x128xf32>
    %100 = vector.extract_strided_slice %98 {offsets = [0, 0], sizes = [8, 32], strides = [1, 1]} : vector<8x128xf32> to vector<8x32xf32>
    %101 = vector.extract_strided_slice %98 {offsets = [0, 32], sizes = [8, 32], strides = [1, 1]} : vector<8x128xf32> to vector<8x32xf32>
    %102 = vector.extract_strided_slice %99 {offsets = [0, 64], sizes = [8, 32], strides = [1, 1]} : vector<8x128xf32> to vector<8x32xf32>
    %103 = vector.extract_strided_slice %98 {offsets = [0, 96], sizes = [8, 32], strides = [1, 1]} : vector<8x128xf32> to vector<8x32xf32>
    %104 = arith.mulf %101, %66 : vector<8x32xf32>
    %105 = arith.mulf %100, %102 : vector<8x32xf32>
    %106 = arith.addf %104, %105 : vector<8x32xf32>
    %107 = math.tanh %106 : vector<8x32xf32>
    %108 = arith.mulf %103, %107 : vector<8x32xf32>
    %c3_i32 = arith.constant 3 : i32
    %109 = tpu.concatenate %93, %108 in 1 : vector<8x32xf32>, vector<8x32xf32> -> vector<8x64xf32>
    %cst_25 = arith.constant dense<0.000000e+00> : vector<8x256xf32>
    %110 = tpu.matmul %109, %0, %cst_25 {dimension_numbers = #tpu.dot_dimension_numbers<[1], [0], [0], [1], [0, 0, 1, 1], [], []>} : vector<8x64xf32>, vector<64x256xf32>, vector<8x256xf32> -> vector<8x256xf32>
    %c8_i32_26 = arith.constant 8 : i32
    %111 = arith.muli %c3_i32, %c8_i32_26 : i32
    %112 = tpu.assume_multiple %111, 8 : i32
    %113 = arith.index_cast %112 : i32 to index
    %c0_27 = arith.constant 0 : index
    %114 = vector.load %arg9[%113, %c0_27] : memref<64x128xf32, #tpu.memory_space<vmem>>, vector<8x128xf32>
    %115 = vector.extract_strided_slice %110 {offsets = [0, 0], sizes = [8, 128], strides = [1, 1]} : vector<8x256xf32> to vector<8x128xf32>
    %116 = arith.addf %115, %114 : vector<8x128xf32>
    %117 = vector.extract_strided_slice %110 {offsets = [0, 128], sizes = [8, 128], strides = [1, 1]} : vector<8x256xf32> to vector<8x128xf32>
    %118 = arith.addf %117, %11 : vector<8x128xf32>
    %119 = arith.negf %116 : vector<8x128xf32>
    %120 = math.exp %119 : vector<8x128xf32>
    %cst_28 = arith.constant 1.000000e+00 : f32
    %121 = vector.broadcast %cst_28 : f32 to vector<8x128xf32>
    %122 = arith.addf %121, %120 : vector<8x128xf32>
    %123 = arith.divf %121, %122 : vector<8x128xf32>
    %124 = math.tanh %116 : vector<8x128xf32>
    %125 = vector.extract_strided_slice %123 {offsets = [0, 0], sizes = [8, 32], strides = [1, 1]} : vector<8x128xf32> to vector<8x32xf32>
    %126 = vector.extract_strided_slice %123 {offsets = [0, 32], sizes = [8, 32], strides = [1, 1]} : vector<8x128xf32> to vector<8x32xf32>
    %127 = vector.extract_strided_slice %124 {offsets = [0, 64], sizes = [8, 32], strides = [1, 1]} : vector<8x128xf32> to vector<8x32xf32>
    %128 = vector.extract_strided_slice %123 {offsets = [0, 96], sizes = [8, 32], strides = [1, 1]} : vector<8x128xf32> to vector<8x32xf32>
    %129 = arith.mulf %126, %91 : vector<8x32xf32>
    %130 = arith.mulf %125, %127 : vector<8x32xf32>
    %131 = arith.addf %129, %130 : vector<8x32xf32>
    %132 = math.tanh %131 : vector<8x32xf32>
    %133 = arith.mulf %128, %132 : vector<8x32xf32>
    %134 = arith.negf %118 : vector<8x128xf32>
    %135 = math.exp %134 : vector<8x128xf32>
    %cst_29 = arith.constant 1.000000e+00 : f32
    %136 = vector.broadcast %cst_29 : f32 to vector<8x128xf32>
    %137 = arith.addf %136, %135 : vector<8x128xf32>
    %138 = arith.divf %136, %137 : vector<8x128xf32>
    %139 = math.tanh %118 : vector<8x128xf32>
    %140 = vector.extract_strided_slice %138 {offsets = [0, 0], sizes = [8, 32], strides = [1, 1]} : vector<8x128xf32> to vector<8x32xf32>
    %141 = vector.extract_strided_slice %138 {offsets = [0, 32], sizes = [8, 32], strides = [1, 1]} : vector<8x128xf32> to vector<8x32xf32>
    %142 = vector.extract_strided_slice %139 {offsets = [0, 64], sizes = [8, 32], strides = [1, 1]} : vector<8x128xf32> to vector<8x32xf32>
    %143 = vector.extract_strided_slice %138 {offsets = [0, 96], sizes = [8, 32], strides = [1, 1]} : vector<8x128xf32> to vector<8x32xf32>
    %144 = arith.mulf %141, %106 : vector<8x32xf32>
    %145 = arith.mulf %140, %142 : vector<8x32xf32>
    %146 = arith.addf %144, %145 : vector<8x32xf32>
    %147 = math.tanh %146 : vector<8x32xf32>
    %148 = arith.mulf %143, %147 : vector<8x32xf32>
    %c4_i32 = arith.constant 4 : i32
    %149 = tpu.concatenate %133, %148 in 1 : vector<8x32xf32>, vector<8x32xf32> -> vector<8x64xf32>
    %cst_30 = arith.constant dense<0.000000e+00> : vector<8x256xf32>
    %150 = tpu.matmul %149, %0, %cst_30 {dimension_numbers = #tpu.dot_dimension_numbers<[1], [0], [0], [1], [0, 0, 1, 1], [], []>} : vector<8x64xf32>, vector<64x256xf32>, vector<8x256xf32> -> vector<8x256xf32>
    %c8_i32_31 = arith.constant 8 : i32
    %151 = arith.muli %c4_i32, %c8_i32_31 : i32
    %152 = tpu.assume_multiple %151, 8 : i32
    %153 = arith.index_cast %152 : i32 to index
    %c0_32 = arith.constant 0 : index
    %154 = vector.load %arg9[%153, %c0_32] : memref<64x128xf32, #tpu.memory_space<vmem>>, vector<8x128xf32>
    %155 = vector.extract_strided_slice %150 {offsets = [0, 0], sizes = [8, 128], strides = [1, 1]} : vector<8x256xf32> to vector<8x128xf32>
    %156 = arith.addf %155, %154 : vector<8x128xf32>
    %157 = vector.extract_strided_slice %150 {offsets = [0, 128], sizes = [8, 128], strides = [1, 1]} : vector<8x256xf32> to vector<8x128xf32>
    %158 = arith.addf %157, %11 : vector<8x128xf32>
    %159 = arith.negf %156 : vector<8x128xf32>
    %160 = math.exp %159 : vector<8x128xf32>
    %cst_33 = arith.constant 1.000000e+00 : f32
    %161 = vector.broadcast %cst_33 : f32 to vector<8x128xf32>
    %162 = arith.addf %161, %160 : vector<8x128xf32>
    %163 = arith.divf %161, %162 : vector<8x128xf32>
    %164 = math.tanh %156 : vector<8x128xf32>
    %165 = vector.extract_strided_slice %163 {offsets = [0, 0], sizes = [8, 32], strides = [1, 1]} : vector<8x128xf32> to vector<8x32xf32>
    %166 = vector.extract_strided_slice %163 {offsets = [0, 32], sizes = [8, 32], strides = [1, 1]} : vector<8x128xf32> to vector<8x32xf32>
    %167 = vector.extract_strided_slice %164 {offsets = [0, 64], sizes = [8, 32], strides = [1, 1]} : vector<8x128xf32> to vector<8x32xf32>
    %168 = vector.extract_strided_slice %163 {offsets = [0, 96], sizes = [8, 32], strides = [1, 1]} : vector<8x128xf32> to vector<8x32xf32>
    %169 = arith.mulf %166, %131 : vector<8x32xf32>
    %170 = arith.mulf %165, %167 : vector<8x32xf32>
    %171 = arith.addf %169, %170 : vector<8x32xf32>
    %172 = math.tanh %171 : vector<8x32xf32>
    %173 = arith.mulf %168, %172 : vector<8x32xf32>
    %174 = arith.negf %158 : vector<8x128xf32>
    %175 = math.exp %174 : vector<8x128xf32>
    %cst_34 = arith.constant 1.000000e+00 : f32
    %176 = vector.broadcast %cst_34 : f32 to vector<8x128xf32>
    %177 = arith.addf %176, %175 : vector<8x128xf32>
    %178 = arith.divf %176, %177 : vector<8x128xf32>
    %179 = math.tanh %158 : vector<8x128xf32>
    %180 = vector.extract_strided_slice %178 {offsets = [0, 0], sizes = [8, 32], strides = [1, 1]} : vector<8x128xf32> to vector<8x32xf32>
    %181 = vector.extract_strided_slice %178 {offsets = [0, 32], sizes = [8, 32], strides = [1, 1]} : vector<8x128xf32> to vector<8x32xf32>
    %182 = vector.extract_strided_slice %179 {offsets = [0, 64], sizes = [8, 32], strides = [1, 1]} : vector<8x128xf32> to vector<8x32xf32>
    %183 = vector.extract_strided_slice %178 {offsets = [0, 96], sizes = [8, 32], strides = [1, 1]} : vector<8x128xf32> to vector<8x32xf32>
    %184 = arith.mulf %181, %146 : vector<8x32xf32>
    %185 = arith.mulf %180, %182 : vector<8x32xf32>
    %186 = arith.addf %184, %185 : vector<8x32xf32>
    %187 = math.tanh %186 : vector<8x32xf32>
    %188 = arith.mulf %183, %187 : vector<8x32xf32>
    %c5_i32 = arith.constant 5 : i32
    %189 = tpu.concatenate %173, %188 in 1 : vector<8x32xf32>, vector<8x32xf32> -> vector<8x64xf32>
    %cst_35 = arith.constant dense<0.000000e+00> : vector<8x256xf32>
    %190 = tpu.matmul %189, %0, %cst_35 {dimension_numbers = #tpu.dot_dimension_numbers<[1], [0], [0], [1], [0, 0, 1, 1], [], []>} : vector<8x64xf32>, vector<64x256xf32>, vector<8x256xf32> -> vector<8x256xf32>
    %c8_i32_36 = arith.constant 8 : i32
    %191 = arith.muli %c5_i32, %c8_i32_36 : i32
    %192 = tpu.assume_multiple %191, 8 : i32
    %193 = arith.index_cast %192 : i32 to index
    %c0_37 = arith.constant 0 : index
    %194 = vector.load %arg9[%193, %c0_37] : memref<64x128xf32, #tpu.memory_space<vmem>>, vector<8x128xf32>
    %195 = vector.extract_strided_slice %190 {offsets = [0, 0], sizes = [8, 128], strides = [1, 1]} : vector<8x256xf32> to vector<8x128xf32>
    %196 = arith.addf %195, %194 : vector<8x128xf32>
    %197 = vector.extract_strided_slice %190 {offsets = [0, 128], sizes = [8, 128], strides = [1, 1]} : vector<8x256xf32> to vector<8x128xf32>
    %198 = arith.addf %197, %11 : vector<8x128xf32>
    %199 = arith.negf %196 : vector<8x128xf32>
    %200 = math.exp %199 : vector<8x128xf32>
    %cst_38 = arith.constant 1.000000e+00 : f32
    %201 = vector.broadcast %cst_38 : f32 to vector<8x128xf32>
    %202 = arith.addf %201, %200 : vector<8x128xf32>
    %203 = arith.divf %201, %202 : vector<8x128xf32>
    %204 = math.tanh %196 : vector<8x128xf32>
    %205 = vector.extract_strided_slice %203 {offsets = [0, 0], sizes = [8, 32], strides = [1, 1]} : vector<8x128xf32> to vector<8x32xf32>
    %206 = vector.extract_strided_slice %203 {offsets = [0, 32], sizes = [8, 32], strides = [1, 1]} : vector<8x128xf32> to vector<8x32xf32>
    %207 = vector.extract_strided_slice %204 {offsets = [0, 64], sizes = [8, 32], strides = [1, 1]} : vector<8x128xf32> to vector<8x32xf32>
    %208 = vector.extract_strided_slice %203 {offsets = [0, 96], sizes = [8, 32], strides = [1, 1]} : vector<8x128xf32> to vector<8x32xf32>
    %209 = arith.mulf %206, %171 : vector<8x32xf32>
    %210 = arith.mulf %205, %207 : vector<8x32xf32>
    %211 = arith.addf %209, %210 : vector<8x32xf32>
    %212 = math.tanh %211 : vector<8x32xf32>
    %213 = arith.mulf %208, %212 : vector<8x32xf32>
    %214 = arith.negf %198 : vector<8x128xf32>
    %215 = math.exp %214 : vector<8x128xf32>
    %cst_39 = arith.constant 1.000000e+00 : f32
    %216 = vector.broadcast %cst_39 : f32 to vector<8x128xf32>
    %217 = arith.addf %216, %215 : vector<8x128xf32>
    %218 = arith.divf %216, %217 : vector<8x128xf32>
    %219 = math.tanh %198 : vector<8x128xf32>
    %220 = vector.extract_strided_slice %218 {offsets = [0, 0], sizes = [8, 32], strides = [1, 1]} : vector<8x128xf32> to vector<8x32xf32>
    %221 = vector.extract_strided_slice %218 {offsets = [0, 32], sizes = [8, 32], strides = [1, 1]} : vector<8x128xf32> to vector<8x32xf32>
    %222 = vector.extract_strided_slice %219 {offsets = [0, 64], sizes = [8, 32], strides = [1, 1]} : vector<8x128xf32> to vector<8x32xf32>
    %223 = vector.extract_strided_slice %218 {offsets = [0, 96], sizes = [8, 32], strides = [1, 1]} : vector<8x128xf32> to vector<8x32xf32>
    %224 = arith.mulf %221, %186 : vector<8x32xf32>
    %225 = arith.mulf %220, %222 : vector<8x32xf32>
    %226 = arith.addf %224, %225 : vector<8x32xf32>
    %227 = math.tanh %226 : vector<8x32xf32>
    %228 = arith.mulf %223, %227 : vector<8x32xf32>
    %c6_i32 = arith.constant 6 : i32
    %229 = tpu.concatenate %213, %228 in 1 : vector<8x32xf32>, vector<8x32xf32> -> vector<8x64xf32>
    %cst_40 = arith.constant dense<0.000000e+00> : vector<8x256xf32>
    %230 = tpu.matmul %229, %0, %cst_40 {dimension_numbers = #tpu.dot_dimension_numbers<[1], [0], [0], [1], [0, 0, 1, 1], [], []>} : vector<8x64xf32>, vector<64x256xf32>, vector<8x256xf32> -> vector<8x256xf32>
    %c8_i32_41 = arith.constant 8 : i32
    %231 = arith.muli %c6_i32, %c8_i32_41 : i32
    %232 = tpu.assume_multiple %231, 8 : i32
    %233 = arith.index_cast %232 : i32 to index
    %c0_42 = arith.constant 0 : index
    %234 = vector.load %arg9[%233, %c0_42] : memref<64x128xf32, #tpu.memory_space<vmem>>, vector<8x128xf32>
    %235 = vector.extract_strided_slice %230 {offsets = [0, 0], sizes = [8, 128], strides = [1, 1]} : vector<8x256xf32> to vector<8x128xf32>
    %236 = arith.addf %235, %234 : vector<8x128xf32>
    %237 = vector.extract_strided_slice %230 {offsets = [0, 128], sizes = [8, 128], strides = [1, 1]} : vector<8x256xf32> to vector<8x128xf32>
    %238 = arith.addf %237, %11 : vector<8x128xf32>
    %239 = arith.negf %236 : vector<8x128xf32>
    %240 = math.exp %239 : vector<8x128xf32>
    %cst_43 = arith.constant 1.000000e+00 : f32
    %241 = vector.broadcast %cst_43 : f32 to vector<8x128xf32>
    %242 = arith.addf %241, %240 : vector<8x128xf32>
    %243 = arith.divf %241, %242 : vector<8x128xf32>
    %244 = math.tanh %236 : vector<8x128xf32>
    %245 = vector.extract_strided_slice %243 {offsets = [0, 0], sizes = [8, 32], strides = [1, 1]} : vector<8x128xf32> to vector<8x32xf32>
    %246 = vector.extract_strided_slice %243 {offsets = [0, 32], sizes = [8, 32], strides = [1, 1]} : vector<8x128xf32> to vector<8x32xf32>
    %247 = vector.extract_strided_slice %244 {offsets = [0, 64], sizes = [8, 32], strides = [1, 1]} : vector<8x128xf32> to vector<8x32xf32>
    %248 = vector.extract_strided_slice %243 {offsets = [0, 96], sizes = [8, 32], strides = [1, 1]} : vector<8x128xf32> to vector<8x32xf32>
    %249 = arith.mulf %246, %211 : vector<8x32xf32>
    %250 = arith.mulf %245, %247 : vector<8x32xf32>
    %251 = arith.addf %249, %250 : vector<8x32xf32>
    %252 = math.tanh %251 : vector<8x32xf32>
    %253 = arith.mulf %248, %252 : vector<8x32xf32>
    %254 = arith.negf %238 : vector<8x128xf32>
    %255 = math.exp %254 : vector<8x128xf32>
    %cst_44 = arith.constant 1.000000e+00 : f32
    %256 = vector.broadcast %cst_44 : f32 to vector<8x128xf32>
    %257 = arith.addf %256, %255 : vector<8x128xf32>
    %258 = arith.divf %256, %257 : vector<8x128xf32>
    %259 = math.tanh %238 : vector<8x128xf32>
    %260 = vector.extract_strided_slice %258 {offsets = [0, 0], sizes = [8, 32], strides = [1, 1]} : vector<8x128xf32> to vector<8x32xf32>
    %261 = vector.extract_strided_slice %258 {offsets = [0, 32], sizes = [8, 32], strides = [1, 1]} : vector<8x128xf32> to vector<8x32xf32>
    %262 = vector.extract_strided_slice %259 {offsets = [0, 64], sizes = [8, 32], strides = [1, 1]} : vector<8x128xf32> to vector<8x32xf32>
    %263 = vector.extract_strided_slice %258 {offsets = [0, 96], sizes = [8, 32], strides = [1, 1]} : vector<8x128xf32> to vector<8x32xf32>
    %264 = arith.mulf %261, %226 : vector<8x32xf32>
    %265 = arith.mulf %260, %262 : vector<8x32xf32>
    %266 = arith.addf %264, %265 : vector<8x32xf32>
    %267 = math.tanh %266 : vector<8x32xf32>
    %268 = arith.mulf %263, %267 : vector<8x32xf32>
    %c7_i32 = arith.constant 7 : i32
    %269 = tpu.concatenate %253, %268 in 1 : vector<8x32xf32>, vector<8x32xf32> -> vector<8x64xf32>
    %cst_45 = arith.constant dense<0.000000e+00> : vector<8x256xf32>
    %270 = tpu.matmul %269, %0, %cst_45 {dimension_numbers = #tpu.dot_dimension_numbers<[1], [0], [0], [1], [0, 0, 1, 1], [], []>} : vector<8x64xf32>, vector<64x256xf32>, vector<8x256xf32> -> vector<8x256xf32>
    %c8_i32_46 = arith.constant 8 : i32
    %271 = arith.muli %c7_i32, %c8_i32_46 : i32
    %272 = tpu.assume_multiple %271, 8 : i32
    %273 = arith.index_cast %272 : i32 to index
    %c0_47 = arith.constant 0 : index
    %274 = vector.load %arg9[%273, %c0_47] : memref<64x128xf32, #tpu.memory_space<vmem>>, vector<8x128xf32>
    %275 = vector.extract_strided_slice %270 {offsets = [0, 0], sizes = [8, 128], strides = [1, 1]} : vector<8x256xf32> to vector<8x128xf32>
    %276 = arith.addf %275, %274 : vector<8x128xf32>
    %277 = vector.extract_strided_slice %270 {offsets = [0, 128], sizes = [8, 128], strides = [1, 1]} : vector<8x256xf32> to vector<8x128xf32>
    %278 = arith.addf %277, %11 : vector<8x128xf32>
    %279 = arith.negf %276 : vector<8x128xf32>
    %280 = math.exp %279 : vector<8x128xf32>
    %cst_48 = arith.constant 1.000000e+00 : f32
    %281 = vector.broadcast %cst_48 : f32 to vector<8x128xf32>
    %282 = arith.addf %281, %280 : vector<8x128xf32>
    %283 = arith.divf %281, %282 : vector<8x128xf32>
    %284 = math.tanh %276 : vector<8x128xf32>
    %285 = vector.extract_strided_slice %283 {offsets = [0, 0], sizes = [8, 32], strides = [1, 1]} : vector<8x128xf32> to vector<8x32xf32>
    %286 = vector.extract_strided_slice %283 {offsets = [0, 32], sizes = [8, 32], strides = [1, 1]} : vector<8x128xf32> to vector<8x32xf32>
    %287 = vector.extract_strided_slice %284 {offsets = [0, 64], sizes = [8, 32], strides = [1, 1]} : vector<8x128xf32> to vector<8x32xf32>
    %288 = vector.extract_strided_slice %283 {offsets = [0, 96], sizes = [8, 32], strides = [1, 1]} : vector<8x128xf32> to vector<8x32xf32>
    %289 = arith.mulf %286, %251 : vector<8x32xf32>
    %290 = arith.mulf %285, %287 : vector<8x32xf32>
    %291 = arith.addf %289, %290 : vector<8x32xf32>
    %292 = math.tanh %291 : vector<8x32xf32>
    %293 = arith.mulf %288, %292 : vector<8x32xf32>
    %294 = arith.negf %278 : vector<8x128xf32>
    %295 = math.exp %294 : vector<8x128xf32>
    %cst_49 = arith.constant 1.000000e+00 : f32
    %296 = vector.broadcast %cst_49 : f32 to vector<8x128xf32>
    %297 = arith.addf %296, %295 : vector<8x128xf32>
    %298 = arith.divf %296, %297 : vector<8x128xf32>
    %299 = math.tanh %278 : vector<8x128xf32>
    %300 = vector.extract_strided_slice %298 {offsets = [0, 0], sizes = [8, 32], strides = [1, 1]} : vector<8x128xf32> to vector<8x32xf32>
    %301 = vector.extract_strided_slice %298 {offsets = [0, 32], sizes = [8, 32], strides = [1, 1]} : vector<8x128xf32> to vector<8x32xf32>
    %302 = vector.extract_strided_slice %299 {offsets = [0, 64], sizes = [8, 32], strides = [1, 1]} : vector<8x128xf32> to vector<8x32xf32>
    %303 = vector.extract_strided_slice %298 {offsets = [0, 96], sizes = [8, 32], strides = [1, 1]} : vector<8x128xf32> to vector<8x32xf32>
    %304 = arith.mulf %301, %266 : vector<8x32xf32>
    %305 = arith.mulf %300, %302 : vector<8x32xf32>
    %306 = arith.addf %304, %305 : vector<8x32xf32>
    %307 = math.tanh %306 : vector<8x32xf32>
    %308 = arith.mulf %303, %307 : vector<8x32xf32>
    %c7_i32_50 = arith.constant 7 : i32
    %309 = tpu.concatenate %293, %308 in 1 : vector<8x32xf32>, vector<8x32xf32> -> vector<8x64xf32>
    %310 = vector.extract_strided_slice %0 {offsets = [0, 128], sizes = [64, 128], strides = [1, 1]} : vector<64x256xf32> to vector<64x128xf32>
    %cst_51 = arith.constant dense<0.000000e+00> : vector<8x128xf32>
    %311 = tpu.matmul %309, %310, %cst_51 {dimension_numbers = #tpu.dot_dimension_numbers<[1], [0], [0], [1], [0, 0, 1, 1], [], []>} : vector<8x64xf32>, vector<64x128xf32>, vector<8x128xf32> -> vector<8x128xf32>
    %312 = arith.addf %311, %11 : vector<8x128xf32>
    %313 = arith.negf %312 : vector<8x128xf32>
    %314 = math.exp %313 : vector<8x128xf32>
    %cst_52 = arith.constant 1.000000e+00 : f32
    %315 = vector.broadcast %cst_52 : f32 to vector<8x128xf32>
    %316 = arith.addf %315, %314 : vector<8x128xf32>
    %317 = arith.divf %315, %316 : vector<8x128xf32>
    %318 = math.tanh %312 : vector<8x128xf32>
    %319 = vector.extract_strided_slice %317 {offsets = [0, 0], sizes = [8, 32], strides = [1, 1]} : vector<8x128xf32> to vector<8x32xf32>
    %320 = vector.extract_strided_slice %317 {offsets = [0, 32], sizes = [8, 32], strides = [1, 1]} : vector<8x128xf32> to vector<8x32xf32>
    %321 = vector.extract_strided_slice %318 {offsets = [0, 64], sizes = [8, 32], strides = [1, 1]} : vector<8x128xf32> to vector<8x32xf32>
    %322 = vector.extract_strided_slice %317 {offsets = [0, 96], sizes = [8, 32], strides = [1, 1]} : vector<8x128xf32> to vector<8x32xf32>
    %323 = arith.mulf %320, %306 : vector<8x32xf32>
    %324 = arith.mulf %319, %321 : vector<8x32xf32>
    %325 = arith.addf %323, %324 : vector<8x32xf32>
    %326 = math.tanh %325 : vector<8x32xf32>
    %327 = arith.mulf %322, %326 : vector<8x32xf32>
    %328 = tpu.concatenate %293, %291, %327, %325 in 1 : vector<8x32xf32>, vector<8x32xf32>, vector<8x32xf32>, vector<8x32xf32> -> vector<8x128xf32>
    %c0_53 = arith.constant 0 : index
    %c0_54 = arith.constant 0 : index
    %329 = vector.load %arg6[%c0_53, %c0_54] : memref<128x128xf32, #tpu.memory_space<vmem>>, vector<128x128xf32>
    %cst_55 = arith.constant dense<0.000000e+00> : vector<8x128xf32>
    %330 = tpu.matmul %328, %329, %cst_55 {dimension_numbers = #tpu.dot_dimension_numbers<[1], [0], [0], [1], [0, 0, 1, 1], [], []>} : vector<8x128xf32>, vector<128x128xf32>, vector<8x128xf32> -> vector<8x128xf32>
    %c0_56 = arith.constant 0 : index
    %c0_57 = arith.constant 0 : index
    %331 = vector.load %arg7[%c0_56, %c0_57] : memref<1x128xf32, #tpu.memory_space<vmem>>, vector<1x128xf32>
    %332 = vector.broadcast %331 : vector<1x128xf32> to vector<8x128xf32>
    %333 = arith.addf %330, %332 : vector<8x128xf32>
    %334 = math.tanh %333 : vector<8x128xf32>
    %c0_58 = arith.constant 0 : index
    %c0_59 = arith.constant 0 : index
    %335 = vector.load %arg8[%c0_58, %c0_59] : memref<8x128xf32, #tpu.memory_space<vmem>>, vector<8x128xf32>
    tpu.vector_store %arg8[%c0_58, %c0_59], %334 {strides = array<i32>} : memref<8x128xf32, #tpu.memory_space<vmem>>, vector<8x128xf32>,
    return
  }
  func.func @transform_0(%arg0: i32) -> (i32, i32, i32) {
    %c0_i32 = arith.constant 0 : i32
    %c0_i32_0 = arith.constant 0 : i32
    %c0_i32_1 = arith.constant 0 : i32
    return %c0_i32, %arg0, %c0_i32_0 : i32, i32, i32
  }
  func.func @transform_1(%arg0: i32) -> (i32, i32) {
    %c0_i32 = arith.constant 0 : i32
    %c0_i32_0 = arith.constant 0 : i32
    %c0_i32_1 = arith.constant 0 : i32
    return %c0_i32, %c0_i32_0 : i32, i32
  }
  func.func @transform_2(%arg0: i32) -> (i32, i32) {
    %c0_i32 = arith.constant 0 : i32
    %c0_i32_0 = arith.constant 0 : i32
    %c0_i32_1 = arith.constant 0 : i32
    return %c0_i32, %c0_i32_0 : i32, i32
  }
  func.func @transform_3(%arg0: i32) -> (i32, i32) {
    %c0_i32 = arith.constant 0 : i32
    %c0_i32_0 = arith.constant 0 : i32
    %c0_i32_1 = arith.constant 0 : i32
    return %c0_i32, %c0_i32_0 : i32, i32
  }
  func.func @transform_4(%arg0: i32) -> (i32, i32) {
    %c0_i32 = arith.constant 0 : i32
    %c0_i32_0 = arith.constant 0 : i32
    %c0_i32_1 = arith.constant 0 : i32
    return %c0_i32, %c0_i32_0 : i32, i32
  }
  func.func @transform_5(%arg0: i32) -> (i32, i32) {
    %c0_i32 = arith.constant 0 : i32
    %c0_i32_0 = arith.constant 0 : i32
    %c0_i32_1 = arith.constant 0 : i32
    return %c0_i32, %c0_i32_0 : i32, i32
  }
  func.func @transform_6(%arg0: i32) -> (i32, i32) {
    %c0_i32 = arith.constant 0 : i32
    %c0_i32_0 = arith.constant 0 : i32
    %c0_i32_1 = arith.constant 0 : i32
    return %c0_i32, %c0_i32_0 : i32, i32
  }
  func.func @transform_7(%arg0: i32) -> (i32, i32) {
    %c0_i32 = arith.constant 0 : i32
    %c0_i32_0 = arith.constant 0 : i32
    return %arg0, %c0_i32 : i32, i32
  }
}

</mosaic_0001>

<bundles_post_ra>
// kernel: ques_embedding_forward_time_major.1
= control target key start
LH: loop header
LB: loop body
LE: loop exit
PB: predicated region body
PF: predicated region fallthrough
CT: control target
= control target key end

     0   :  { %12 = vsyncpa [#allocation4], 0  ;;  %s2282_s0 = inlined_call_operand.vmem [shape: f32[8,8,32], index: 0, kind: input, shape index: {}]   ;;  %s2283_s1 = inlined_call_operand.vmem [shape: f32[32,128], index: 1, kind: input, shape index: {}]   ;;  %s2284_s2 = inlined_call_operand.vmem [shape: f32[1,128], index: 2, kind: input, shape index: {}]   ;;  %s2285_s3 = inlined_call_operand.hbm [shape: f32[64,256], index: 3, kind: input, shape index: {}]   ;;  %s2286_s4 = inlined_call_operand.vmem [shape: f32[1,128], index: 4, kind: input, shape index: {}]   ;;  %s2287_s5 = inlined_call_operand.hbm [shape: f32[128,128], index: 5, kind: input, shape index: {}]   ;;  %s2288_s6 = inlined_call_operand.vmem [shape: f32[1,128], index: 6, kind: input, shape index: {}]   ;;  %s2289_s7 = inlined_call_operand.vmem [shape: f32[8,128], index: 7, kind: output, shape index: {}]  }
   0x1   :  { %13 = vsyncpa [#allocation6], 0  ;;  %s1913_s24 = smov [#allocation3]   ;;  %s1865_s28 = scalar_lea.hbm %s2285_s3, 2048 }
   0x2   :  { %s25_s25 = sshll.u32 %s1913_s24, 4  ;;  %p1866_p0 = scmp.ne.s32.totalorder %s2285_s3, %s1865_s28  ;;  %s26_s25 = int_to_ptr.vmem [resolvable:$true] %s25_s25 }
   0x3   :  { %p1869_p1 = scmp.lt.u32.totalorder %s1865_s28, %s2285_s3 }
   0x5   :  { %p1871_p2 = pnand %p1869_p1, %p1866_p0 }
   0x7   :  { %1874 = shalt.err (!%p1871_p2)
}
   0x8   :  { %s1875_s10 = scalar_lea.vmem %s26_s25, 2048  ;;  %p1880_p4 = scmp.lt.s32.totalorder %s26_s25, %s26_s25 }
   0x9   :  { %p1876_p3 = scmp.ne.s32.totalorder %s26_s25, %s1875_s10  ;;  %p1881_p5 = scmp.lt.s32.totalorder %s1875_s10, %s1875_s10 }
   0xb   :  { %p1882_p6 = por %p1881_p5, %p1880_p4 }
   0xd   :  { %p1883_p7 = pnand %p1882_p6, %p1876_p3 }
   0xf   :  { %1886 = shalt.err (!%p1883_p7)
}
  0x10   :  { %s1914_s11 = smov 256   ;;  %s1915_s12 = smov 16  }
  0x11   :  { %31 = dma.hbm_to_vmem [thread:$0]  %s2285_s3, 2048, %s26_s25, [#allocation4], %s1914_s11, %s1914_s11, %s1915_s12  }
  0x12   :  { %s1916_s15 = smov [#allocation5]   ;;  %s1887_s19 = scalar_lea.hbm %s2287_s5, 2048 }
  0x13   :  { %s39_s16 = sshll.u32 %s1916_s15, 4  ;;  %p1888_p8 = scmp.ne.s32.totalorder %s2287_s5, %s1887_s19  ;;  %s40_s16 = int_to_ptr.vmem [resolvable:$true] %s39_s16 }
  0x14   :  { %p1891_p9 = scmp.lt.u32.totalorder %s1887_s19, %s2287_s5 }
  0x16   :  { %p1893_p10 = pnand %p1891_p9, %p1888_p8 }
  0x18   :  { %1896 = shalt.err (!%p1893_p10)
}
  0x19   :  { %s1897_s24 = scalar_lea.vmem %s40_s16, 2048  ;;  %p1902_p12 = scmp.lt.s32.totalorder %s40_s16, %s40_s16 }
  0x1a   :  { %p1898_p11 = scmp.ne.s32.totalorder %s40_s16, %s1897_s24  ;;  %p1903_p13 = scmp.lt.s32.totalorder %s1897_s24, %s1897_s24 }
  0x1c   :  { %p1904_p0 = por %p1903_p13, %p1902_p12 }
  0x1e   :  { %p1905_p1 = pnand %p1904_p0, %p1898_p11 }
  0x20   :  { %1908 = shalt.err (!%p1905_p1)
}
  0x21   :  { %s1917_s3 = smov 128   ;;  %s1918_s25 = smov 8  }
  0x22   :  { %45 = dma.hbm_to_vmem [thread:$0]  %s2287_s5, 2048, %s40_s16, [#allocation6], %s1917_s3, %s1917_s3, %s1918_s25  }
  0x23   :  { %1909 = dma.done.wait [#allocation4], 2048  }
  0x24   :  { %1910 = vsyncadd [#allocation4], 4294965248 }
  0x25   :  { %1911 = dma.done.wait [#allocation6], 2048  }
  0x26   :  { %1912 = vsyncadd [#allocation6], 4294965248  ;;  %vm89_vm0 = vcmask 261120   ;;  %v78_v0 = vld [vmem:[%s2283_s1] sm:$0xff]  ;;  %v79_v1 = vld [vmem:[%s2283_s1 + $0x8] sm:$0xff]  ;;  %v1921_v53 = vmov 0.0  }
  0x27   :  { %v80_v2 = vld [vmem:[%s2283_s1 + $0x10] sm:$0xff]  ;;  %v1567_v3 = vpack.c.bf16 %v79_v1, %v78_v0  ;;  %v81_v4 = vld [vmem:[%s2283_s1 + $0x18] sm:$0xff]  ;;  %v70_v5 = vld [vmem:[%s2282_s0] sm:$0xff]  ;;  %s1919_s1 = smov 64   ;;  %602 = vmatprep.mubr.f32.mxu1 %v1921_v53  ;;  %vm264_vm1 = vcmask 523264   ;;  %vm1923_vm2 = vmmov 0  }
  0x28   :  { %v1571_v6 = vpack.c.bf16 %v81_v4, %v80_v2  ;;  %1501 = vmatprep.mubr.msk.f32.mxu0 %vm89_vm0, %v70_v5  ;;  %v71_v7 = vld [vmem:[%s2282_s0 + $0x8] sm:$0xff]  ;;  %v2012_v8 = vld [vmem:[%s2284_s2] ss:$0 sm:$0xff]  ;;  %s1920_s2 = smov 32   ;;  %v57_v23 = vld [vmem:[#allocation3 + $0x18] sm:$0xff]  ;;  %vm1317_vm3 = vcmask 785408  }
  0x29   :  { %1568 = vmatprep.subr.bf16.mxu0 %v1567_v3  ;;  %v55_v22 = vld [vmem:[#allocation3 + $0x8] sm:$0xff]  ;;  %v54_v24 = vld [vmem:[#allocation3] sm:$0xff]  ;;  %v56_v26 = vld [vmem:[#allocation3 + $0x10] sm:$0xff] }
  0x2a   :  { %1570 = vmatpush3.bf16.msra.mxu0 %v1567_v3  ;;  %v2026_v25 = vpack.c.bf16 %v57_v23, %v55_v22  ;;  %v72_v27 = vld [vmem:[%s2282_s0 + $0x10] sm:$0xff]  ;;  %v73_v28 = vld [vmem:[%s2282_s0 + $0x18] sm:$0xff]  ;;  %v2034_v29 = vpack.c.bf16 %v56_v26, %v54_v24  ;;  %v59_v30 = vld [vmem:[#allocation3 + $0x28] sm:$0xff] }
  0x2b   :  { %1572 = vmatprep.subr.bf16.mxu0 %v1571_v6  ;;  %v61_v31 = vld [vmem:[#allocation3 + $0x38] sm:$0xff]  ;;  %v58_v32 = vld [vmem:[#allocation3 + $0x20] sm:$0xff]  ;;  %v60_v34 = vld [vmem:[#allocation3 + $0x30] sm:$0xff] }
  0x2c   :  { %v2039_v33 = vpack.c.bf16 %v61_v31, %v59_v30  ;;  %v74_v35 = vld [vmem:[%s2282_s0 + $0x20] sm:$0xff]  ;;  %v2045_v36 = vpack.c.bf16 %v60_v34, %v58_v32  ;;  %v75_v37 = vld [vmem:[%s2282_s0 + $0x28] sm:$0xff]  ;;  %v65_v39 = vld [vmem:[#allocation3 + $0x58] sm:$0xff]  ;;  %1608 = vmatprep.subr.bf16.mxu1 %v2026_v25 }
  0x2d   :  { %v63_v38 = vld [vmem:[#allocation3 + $0x48] sm:$0xff]  ;;  %v62_v41 = vld [vmem:[#allocation3 + $0x40] sm:$0xff]  ;;  %v64_v42 = vld [vmem:[#allocation3 + $0x50] sm:$0xff]  ;;  %1610 = vmatpush1.bf16.msra.mxu1 %v2034_v29 }
  0x2e   :  { %1574 = vmatpush3.bf16.msra.mxu0 %v1571_v6  ;;  %v2052_v40 = vpack.c.bf16 %v65_v39, %v63_v38  ;;  %v76_v43 = vld [vmem:[%s2282_s0 + $0x30] sm:$0xff]  ;;  %v67_v44 = vld [vmem:[#allocation3 + $0x68] sm:$0xff]  ;;  %v69_v45 = vld [vmem:[#allocation3 + $0x78] sm:$0xff]  ;;  %1612 = vmatprep.subr.bf16.mxu1 %v2039_v33  ;;  %v2062_v46 = vpack.c.bf16 %v64_v42, %v62_v41 }
  0x2f   :  { %1576 = vmatprep.subr.bf16.mxu0 %v2026_v25  ;;  %v77_v47 = vld [vmem:[%s2282_s0 + $0x38] sm:$0xff]  ;;  %v2069_v48 = vpack.c.bf16 %v69_v45, %v67_v44  ;;  %v66_v49 = vld [vmem:[#allocation3 + $0x60] sm:$0xff]  ;;  %v68_v50 = vld [vmem:[#allocation3 + $0x70] sm:$0xff] }
  0x30   :  { %v2075_v52 = vpack.c.bf16 %v68_v50, %v66_v49  ;;  %v2117_v1 = vld [vmem:[%s2286_s4] ss:$0 sm:$0xff]  ;;  %s1924_s4 = smov 96  }
  0x31   :  { %1502 = vmatmul.mubr.msk.f32.vlgmr.msra.gmra.mrb[0].mxu0 %vm89_vm0, %v71_v7  ;;  %1614 = vmatpush1.bf16.msra.mxu1 %v2045_v36 }
  0x32   :  { %1504 = vmatprep.mubr.msk.f32.mxu0 %vm89_vm0, %v72_v27  ;;  %1578 = vmatpush1.bf16.msra.mxu0 %v2034_v29 }
  0x33   :  { %1580 = vmatprep.subr.bf16.mxu0 %v2039_v33  ;;  %1616 = vmatprep.subr.bf16.mxu1 %v2052_v40 }
  0x35   :  { %1505 = vmatmul.mubr.msk.f32.gmra.mrb[2].mxu0 %vm89_vm0, %v73_v28  ;;  %1618 = vmatpush1.bf16.msra.mxu1 %v2062_v46 }
  0x36   :  { %1507 = vmatprep.mubr.msk.f32.mxu0 %vm89_vm0, %v74_v35  ;;  %1582 = vmatpush1.bf16.msra.mxu0 %v2045_v36 }
  0x37   :  { %1584 = vmatprep.subr.bf16.mxu0 %v2052_v40  ;;  %1620 = vmatprep.subr.bf16.mxu1 %v2069_v48 }
  0x39   :  { %1508 = vmatmul.mubr.msk.f32.gmra.mrb[4].mxu0 %vm89_vm0, %v75_v37  ;;  %1622 = vmatpush1.bf16.msra.mxu1 %v2075_v52 }
  0x3a   :  { %1510 = vmatprep.mubr.msk.f32.mxu0 %vm89_vm0, %v76_v43  ;;  %1586 = vmatpush1.bf16.msra.mxu0 %v2062_v46 }
  0x3b   :  { %1588 = vmatprep.subr.bf16.mxu0 %v2069_v48  ;;  %1640 = vmatprep.subr.bf16.mxu1 %v2026_v25 }
  0x3d   :  { %1511 = vmatmul.mubr.msk.f32.gmra.mrb[6].mxu0 %vm89_vm0, %v77_v47 }
  0x3e   :  { %1590 = vmatpush1.bf16.msra.mxu0 %v2075_v52  ;;  %332 = vmatprep.mubr.f32.mxu0 %v1921_v53 }
  0x3f   :  { %1592 = vmatprep.subr.bf16.mxu0 %v2026_v25 }
 0x104   :  { %v2014_v9 = vpop.f32.mrb[0].mxu0 }
 0x105   :  { %v180_v10 = vpop.f32.mrb[1].mxu0  ;;  %v186_v0 = vadd.f32 %v2014_v9, %v2012_v8 }
 0x106   :  { %v181_v11 = vadd.f32 %v2012_v8, %v180_v10 }
 0x108   :  { %1735 = vtanh.f32 %v181_v11  ;;  %v1430_v13 = vmul.f32 -1.442695, %v181_v11  ;;  %v2089_v56 = vpop.f32.mrb[2].mxu0 }
 0x109   :  { %v2091_v57 = vpop.f32.mrb[3].mxu0 }
 0x10a   :  { %1737 = vpow2.f32 %v1430_v13  ;;  %v191_v41 = vadd.f32 %v2012_v8, %v2091_v57 }
 0x10c   :  { %v2093_v58 = vpop.f32.mrb[4].mxu0 }
 0x10d   :  { %v2095_v59 = vpop.f32.mrb[5].mxu0 }
 0x110   :  { %v2097_v60 = vpop.f32.mrb[6].mxu0 }
 0x111   :  { %v2099_v61 = vpop.f32.mrb[7].mxu0 }
 0x112   :  { %v1736_v12 = vpop.eup %1735 }
 0x113   :  { %244 = vrot.lane.b32.xlu0 %v1736_v12, %s1919_s1 }
 0x114   :  { %v1738_v14 = vpop.eup %1737 }
 0x115   :  { %v238_v15 = vadd.f32 1.0, %v1738_v14 }
 0x117   :  { %1739 = vrcp.f32 %v238_v15 }
 0x121   :  { %v2018_v16 = vpop.eup %1739 }
 0x122   :  { %v242_v19 = vmul.f32 0.0, %v2018_v16 }
 0x185   :  { %v245_v17 = vpop.permute.xlu0 %244 }
 0x186   :  { %v247_v18 = vmul.f32 %v2018_v16, %v245_v17 }
 0x188   :  { %249 = vrot.lane.b32.xlu0 %v247_v18, %s1920_s2 }
 0x1fa   :  { %v250_v20 = vpop.permute.xlu0 %249 }
 0x1fb   :  { %v2023_v21 = vadd.f32 %v250_v20, %v242_v19 }
 0x1fd   :  { %1741 = vtanh.f32 %v2023_v21 }
 0x207   :  { %v1742_v51 = vpop.eup %1741 }
 0x208   :  { %255 = vrot.lane.b32.xlu1 %v1742_v51, %s1919_s1 }
 0x27a   :  { %v256_v54 = vpop.permute.xlu1 %255 }
 0x27b   :  { %v258_v55 = vmul.f32 %v2018_v16, %v256_v54 }
 0x27d   :  { %260 = vrot.lane.b32.xlu1 %v258_v55, %s1920_s2 }
 0x2ef   :  { %v261_v62 = vpop.permute.xlu1 %260 }
 0x2f0   :  { %v263_v63 = vsel %vm89_vm0, %v261_v62, 0.0 }
 0x2f1   :  { %1431 = vmatmul.mubr.msk.f32.vlgmr.msra.gmra.mrb[8].mxu0 %vm264_vm1, %v263_v63 }
 0x2f2   :  { %1594 = vmatpush1.bf16.msra.mxu0 %v2034_v29  ;;  %467 = vmatprep.mubr.f32.mxu0 %v1921_v53 }
 0x2f3   :  { %1596 = vmatprep.subr.bf16.mxu0 %v2039_v33 }
 0x2f6   :  { %1598 = vmatpush1.bf16.msra.mxu0 %v2045_v36 }
 0x2f7   :  { %1600 = vmatprep.subr.bf16.mxu0 %v2052_v40 }
 0x2fa   :  { %1602 = vmatpush1.bf16.msra.mxu0 %v2062_v46 }
 0x2fb   :  { %1604 = vmatprep.subr.bf16.mxu0 %v2069_v48 }
 0x2fe   :  { %1606 = vmatpush1.bf16.msra.mxu0 %v2075_v52 }
 0x2ff   :  { %1624 = vmatprep.subr.bf16.mxu0 %v2026_v25 }
 0x3c4   :  { %v334_v2 = vpop.f32.mrb[8].mxu0 }
 0x3c5   :  { %v341_v3 = vadd.f32 %v334_v2, %v186_v0  ;;  %v336_v4 = vpop.f32.mrb[9].mxu0 }
 0x3c6   :  { %v342_v5 = vadd.f32 %v2117_v1, %v336_v4 }
 0x3c7   :  { %1743 = vtanh.f32 %v341_v3  ;;  %v1432_v10 = vmul.f32 -1.442695, %v341_v3 }
 0x3c8   :  { %1745 = vtanh.f32 %v342_v5  ;;  %v1433_v9 = vmul.f32 -1.442695, %v342_v5 }
 0x3c9   :  { %1747 = vpow2.f32 %v1432_v10 }
 0x3ca   :  { %1749 = vpow2.f32 %v1433_v9 }
 0x3d1   :  { %v1744_v6 = vpop.eup %1743 }
 0x3d2   :  { %v1746_v7 = vpop.eup %1745  ;;  %352 = vrot.lane.b32.xlu0 %v1744_v6, %s1919_s1 }
 0x3d3   :  { %376 = vrot.lane.b32.xlu1 %v1746_v7, %s1919_s1  ;;  %v1748_v11 = vpop.eup %1747 }
 0x3d4   :  { %v1750_v12 = vpop.eup %1749  ;;  %v346_v13 = vadd.f32 1.0, %v1748_v11 }
 0x3d5   :  { %v370_v14 = vadd.f32 1.0, %v1750_v12 }
 0x3d6   :  { %1751 = vrcp.f32 %v346_v13 }
 0x3d7   :  { %1753 = vrcp.f32 %v370_v14 }
 0x3e0   :  { %v1752_v15 = vpop.eup %1751 }
 0x3e1   :  { %v1754_v17 = vpop.eup %1753  ;;  %v350_v22 = vmul.f32 %v1752_v15, %v2023_v21 }
 0x3e2   :  { %v374_v24 = vmul.f32 0.0, %v1754_v17 }
 0x444   :  { %v353_v16 = vpop.permute.xlu0 %352 }
 0x445   :  { %v355_v18 = vmul.f32 %v1752_v15, %v353_v16  ;;  %v377_v19 = vpop.permute.xlu1 %376 }
 0x446   :  { %v379_v20 = vmul.f32 %v1754_v17, %v377_v19 }
 0x447   :  { %357 = vrot.lane.b32.xlu0 %v355_v18, %s1920_s2 }
 0x448   :  { %381 = vrot.lane.b32.xlu1 %v379_v20, %s1920_s2 }
 0x4b9   :  { %v358_v23 = vpop.permute.xlu0 %357 }
 0x4ba   :  { %v360_v26 = vadd.f32 %v358_v23, %v350_v22  ;;  %v382_v27 = vpop.permute.xlu1 %381  ;;  %v196_v23 = vadd.f32 %v2089_v56, %v2012_v8 }
 0x4bb   :  { %v384_v28 = vadd.f32 %v382_v27, %v374_v24 }
 0x4bc   :  { %1755 = vtanh.f32 %v360_v26 }
 0x4bd   :  { %1757 = vtanh.f32 %v384_v28 }
 0x4c6   :  { %v1756_v30 = vpop.eup %1755 }
 0x4c7   :  { %v1758_v31 = vpop.eup %1757  ;;  %363 = vrot.lane.b32.xlu0 %v1756_v30, %s1919_s1 }
 0x4c8   :  { %387 = vrot.lane.b32.xlu1 %v1758_v31, %s1919_s1 }
 0x539   :  { %v364_v32 = vpop.permute.xlu0 %363 }
 0x53a   :  { %v366_v34 = vmul.f32 %v1752_v15, %v364_v32  ;;  %v388_v35 = vpop.permute.xlu1 %387 }
 0x53b   :  { %v390_v37 = vmul.f32 %v1754_v17, %v388_v35 }
 0x53c   :  { %392 = vrot.lane.b32.xlu0 %v366_v34, %s1920_s2 }
 0x53d   :  { %396 = vrot.lane.b32.xlu1 %v390_v37, %s1919_s1 }
 0x5ae   :  { %v393_v21 = vpop.permute.xlu0 %392 }
 0x5af   :  { %v397_v38 = vpop.permute.xlu1 %396 }
 0x5b0   :  { %v399_v39 = vsel %vm89_vm0, %v393_v21, %v397_v38 }
 0x5b1   :  { %1434 = vmatmul.mubr.msk.f32.vlgmr.msra.gmra.mrb[10].mxu0 %vm264_vm1, %v399_v39 }
 0x5b2   :  { %1626 = vmatpush1.bf16.msra.mxu0 %v2034_v29  ;;  %737 = vmatprep.mubr.f32.mxu0 %v1921_v53 }
 0x5b3   :  { %1628 = vmatprep.subr.bf16.mxu0 %v2039_v33 }
 0x5b6   :  { %1630 = vmatpush1.bf16.msra.mxu0 %v2045_v36 }
 0x5b7   :  { %1632 = vmatprep.subr.bf16.mxu0 %v2052_v40 }
 0x5ba   :  { %1634 = vmatpush1.bf16.msra.mxu0 %v2062_v46 }
 0x5bb   :  { %1636 = vmatprep.subr.bf16.mxu0 %v2069_v48 }
 0x5be   :  { %1638 = vmatpush1.bf16.msra.mxu0 %v2075_v52 }
 0x5bf   :  { %1656 = vmatprep.subr.bf16.mxu0 %v2026_v25 }
 0x684   :  { %v469_v42 = vpop.f32.mrb[10].mxu0 }
 0x685   :  { %v476_v43 = vadd.f32 %v469_v42, %v191_v41  ;;  %v471_v44 = vpop.f32.mrb[11].mxu0 }
 0x686   :  { %v477_v45 = vadd.f32 %v2117_v1, %v471_v44 }
 0x687   :  { %1759 = vtanh.f32 %v476_v43  ;;  %v1435_v50 = vmul.f32 -1.442695, %v476_v43 }
 0x688   :  { %1761 = vtanh.f32 %v477_v45  ;;  %v1436_v51 = vmul.f32 -1.442695, %v477_v45 }
 0x689   :  { %1763 = vpow2.f32 %v1435_v50 }
 0x68a   :  { %1765 = vpow2.f32 %v1436_v51 }
 0x691   :  { %v1760_v47 = vpop.eup %1759 }
 0x692   :  { %v1762_v49 = vpop.eup %1761  ;;  %487 = vrot.lane.b32.xlu0 %v1760_v47, %s1919_s1 }
 0x693   :  { %511 = vrot.lane.b32.xlu1 %v1762_v49, %s1919_s1  ;;  %v1764_v54 = vpop.eup %1763 }
 0x694   :  { %v1766_v55 = vpop.eup %1765  ;;  %v481_v57 = vadd.f32 1.0, %v1764_v54 }
 0x695   :  { %v505_v62 = vadd.f32 1.0, %v1766_v55 }
 0x696   :  { %1767 = vrcp.f32 %v481_v57 }
 0x697   :  { %1769 = vrcp.f32 %v505_v62 }
 0x6a0   :  { %v1768_v63 = vpop.eup %1767 }
 0x6a1   :  { %v1770_v2 = vpop.eup %1769  ;;  %v485_v6 = vmul.f32 %v1768_v63, %v360_v26 }
 0x6a2   :  { %v509_v10 = vmul.f32 %v1770_v2, %v384_v28 }
 0x704   :  { %v488_v0 = vpop.permute.xlu0 %487 }
 0x705   :  { %v490_v3 = vmul.f32 %v1768_v63, %v488_v0  ;;  %v512_v4 = vpop.permute.xlu1 %511 }
 0x706   :  { %v514_v5 = vmul.f32 %v1770_v2, %v512_v4 }
 0x707   :  { %492 = vrot.lane.b32.xlu0 %v490_v3, %s1920_s2 }
 0x708   :  { %516 = vrot.lane.b32.xlu1 %v514_v5, %s1920_s2 }
 0x779   :  { %v493_v7 = vpop.permute.xlu0 %492 }
 0x77a   :  { %v495_v9 = vadd.f32 %v493_v7, %v485_v6  ;;  %v517_v11 = vpop.permute.xlu1 %516  ;;  %v201_v6 = vadd.f32 %v2012_v8, %v2095_v59 }
 0x77b   :  { %v519_v12 = vadd.f32 %v517_v11, %v509_v10 }
 0x77c   :  { %1771 = vtanh.f32 %v495_v9 }
 0x77d   :  { %1773 = vtanh.f32 %v519_v12 }
 0x786   :  { %v1772_v13 = vpop.eup %1771 }
 0x787   :  { %v1774_v14 = vpop.eup %1773  ;;  %498 = vrot.lane.b32.xlu0 %v1772_v13, %s1919_s1 }
 0x788   :  { %522 = vrot.lane.b32.xlu1 %v1774_v14, %s1919_s1 }
 0x7f9   :  { %v499_v15 = vpop.permute.xlu0 %498 }
 0x7fa   :  { %v501_v16 = vmul.f32 %v1768_v63, %v499_v15  ;;  %v523_v17 = vpop.permute.xlu1 %522 }
 0x7fb   :  { %v525_v18 = vmul.f32 %v1770_v2, %v523_v17 }
 0x7fc   :  { %527 = vrot.lane.b32.xlu0 %v501_v16, %s1920_s2 }
 0x7fd   :  { %531 = vrot.lane.b32.xlu1 %v525_v18, %s1919_s1 }
 0x86e   :  { %v528_v19 = vpop.permute.xlu0 %527 }
 0x86f   :  { %v532_v20 = vpop.permute.xlu1 %531 }
 0x870   :  { %v534_v22 = vsel %vm89_vm0, %v528_v19, %v532_v20 }
 0x871   :  { %1437 = vmatmul.mubr.msk.f32.vlgmr.msra.gmra.mrb[0].mxu1 %vm264_vm1, %v534_v22 }
 0x872   :  { %1642 = vmatpush1.bf16.msra.mxu1 %v2034_v29  ;;  %872 = vmatprep.mubr.f32.mxu1 %v1921_v53 }
 0x873   :  { %1644 = vmatprep.subr.bf16.mxu1 %v2039_v33 }
 0x876   :  { %1646 = vmatpush1.bf16.msra.mxu1 %v2045_v36 }
 0x877   :  { %1648 = vmatprep.subr.bf16.mxu1 %v2052_v40 }
 0x87a   :  { %1650 = vmatpush1.bf16.msra.mxu1 %v2062_v46 }
 0x87b   :  { %1652 = vmatprep.subr.bf16.mxu1 %v2069_v48 }
 0x87e   :  { %1654 = vmatpush1.bf16.msra.mxu1 %v2075_v52 }
 0x87f   :  { %1672 = vmatprep.subr.bf16.mxu1 %v2026_v25 }
 0x944   :  { %v604_v24 = vpop.f32.mrb[0].mxu1 }
 0x945   :  { %v611_v26 = vadd.f32 %v604_v24, %v196_v23  ;;  %v606_v27 = vpop.f32.mrb[1].mxu1 }
 0x946   :  { %v612_v28 = vadd.f32 %v2117_v1, %v606_v27 }
 0x947   :  { %1775 = vtanh.f32 %v611_v26  ;;  %v1438_v32 = vmul.f32 -1.442695, %v611_v26 }
 0x948   :  { %1777 = vtanh.f32 %v612_v28  ;;  %v1439_v34 = vmul.f32 -1.442695, %v612_v28 }
 0x949   :  { %1779 = vpow2.f32 %v1438_v32 }
 0x94a   :  { %1781 = vpow2.f32 %v1439_v34 }
 0x951   :  { %v1776_v30 = vpop.eup %1775 }
 0x952   :  { %v1778_v31 = vpop.eup %1777  ;;  %622 = vrot.lane.b32.xlu0 %v1776_v30, %s1919_s1 }
 0x953   :  { %646 = vrot.lane.b32.xlu1 %v1778_v31, %s1919_s1  ;;  %v1780_v35 = vpop.eup %1779 }
 0x954   :  { %v1782_v37 = vpop.eup %1781  ;;  %v616_v56 = vadd.f32 1.0, %v1780_v35 }
 0x955   :  { %v640_v21 = vadd.f32 1.0, %v1782_v37 }
 0x956   :  { %1783 = vrcp.f32 %v616_v56 }
 0x957   :  { %1785 = vrcp.f32 %v640_v21 }
 0x960   :  { %v1784_v38 = vpop.eup %1783 }
 0x961   :  { %v1786_v41 = vpop.eup %1785  ;;  %v620_v45 = vmul.f32 %v1784_v38, %v495_v9 }
 0x962   :  { %v644_v49 = vmul.f32 %v1786_v41, %v519_v12 }
 0x9c4   :  { %v623_v39 = vpop.permute.xlu0 %622 }
 0x9c5   :  { %v625_v42 = vmul.f32 %v1784_v38, %v623_v39  ;;  %v647_v43 = vpop.permute.xlu1 %646 }
 0x9c6   :  { %v649_v44 = vmul.f32 %v1786_v41, %v647_v43 }
 0x9c7   :  { %627 = vrot.lane.b32.xlu0 %v625_v42, %s1920_s2 }
 0x9c8   :  { %651 = vrot.lane.b32.xlu1 %v649_v44, %s1920_s2  ;;  %v206_v44 = vadd.f32 %v2093_v58, %v2012_v8 }
 0xa39   :  { %v628_v47 = vpop.permute.xlu0 %627 }
 0xa3a   :  { %v630_v50 = vadd.f32 %v628_v47, %v620_v45  ;;  %v652_v51 = vpop.permute.xlu1 %651 }
 0xa3b   :  { %v654_v54 = vadd.f32 %v652_v51, %v644_v49 }
 0xa3c   :  { %1787 = vtanh.f32 %v630_v50 }
 0xa3d   :  { %1789 = vtanh.f32 %v654_v54 }
 0xa46   :  { %v1788_v55 = vpop.eup %1787 }
 0xa47   :  { %v1790_v57 = vpop.eup %1789  ;;  %633 = vrot.lane.b32.xlu0 %v1788_v55, %s1919_s1 }
 0xa48   :  { %657 = vrot.lane.b32.xlu1 %v1790_v57, %s1919_s1 }
 0xab9   :  { %v634_v62 = vpop.permute.xlu0 %633 }
 0xaba   :  { %v636_v63 = vmul.f32 %v1784_v38, %v634_v62  ;;  %v658_v0 = vpop.permute.xlu1 %657 }
 0xabb   :  { %v660_v2 = vmul.f32 %v1786_v41, %v658_v0 }
 0xabc   :  { %662 = vrot.lane.b32.xlu0 %v636_v63, %s1920_s2 }
 0xabd   :  { %666 = vrot.lane.b32.xlu1 %v660_v2, %s1919_s1 }
 0xb2e   :  { %v663_v3 = vpop.permute.xlu0 %662 }
 0xb2f   :  { %v667_v4 = vpop.permute.xlu1 %666 }
 0xb30   :  { %v669_v5 = vsel %vm89_vm0, %v663_v3, %v667_v4 }
 0xb31   :  { %1440 = vmatmul.mubr.msk.f32.vlgmr.msra.gmra.mrb[12].mxu0 %vm264_vm1, %v669_v5 }
 0xb32   :  { %1658 = vmatpush1.bf16.msra.mxu0 %v2034_v29  ;;  %1007 = vmatprep.mubr.f32.mxu0 %v1921_v53 }
 0xb33   :  { %1660 = vmatprep.subr.bf16.mxu0 %v2039_v33 }
 0xb36   :  { %1662 = vmatpush1.bf16.msra.mxu0 %v2045_v36 }
 0xb37   :  { %1664 = vmatprep.subr.bf16.mxu0 %v2052_v40 }
 0xb3a   :  { %1666 = vmatpush1.bf16.msra.mxu0 %v2062_v46 }
 0xb3b   :  { %1668 = vmatprep.subr.bf16.mxu0 %v2069_v48 }
 0xb3e   :  { %1670 = vmatpush1.bf16.msra.mxu0 %v2075_v52 }
 0xc04   :  { %v739_v7 = vpop.f32.mrb[12].mxu0 }
 0xc05   :  { %v746_v10 = vadd.f32 %v739_v7, %v201_v6  ;;  %v741_v9 = vpop.f32.mrb[13].mxu0 }
 0xc06   :  { %v747_v11 = vadd.f32 %v2117_v1, %v741_v9 }
 0xc07   :  { %1791 = vtanh.f32 %v746_v10  ;;  %v1441_v14 = vmul.f32 -1.442695, %v746_v10 }
 0xc08   :  { %1793 = vtanh.f32 %v747_v11  ;;  %v1442_v15 = vmul.f32 -1.442695, %v747_v11 }
 0xc09   :  { %1795 = vpow2.f32 %v1441_v14 }
 0xc0a   :  { %1797 = vpow2.f32 %v1442_v15 }
 0xc11   :  { %v1792_v12 = vpop.eup %1791 }
 0xc12   :  { %v1794_v13 = vpop.eup %1793  ;;  %757 = vrot.lane.b32.xlu0 %v1792_v12, %s1919_s1 }
 0xc13   :  { %781 = vrot.lane.b32.xlu1 %v1794_v13, %s1919_s1  ;;  %v1796_v16 = vpop.eup %1795 }
 0xc14   :  { %v1798_v17 = vpop.eup %1797  ;;  %v751_v59 = vadd.f32 1.0, %v1796_v16 }
 0xc15   :  { %v775_v18 = vadd.f32 1.0, %v1798_v17 }
 0xc16   :  { %1799 = vrcp.f32 %v751_v59 }
 0xc17   :  { %1801 = vrcp.f32 %v775_v18 }
 0xc20   :  { %v1800_v19 = vpop.eup %1799 }
 0xc21   :  { %v1802_v22 = vpop.eup %1801  ;;  %v755_v27 = vmul.f32 %v1800_v19, %v630_v50 }
 0xc22   :  { %v779_v30 = vmul.f32 %v1802_v22, %v654_v54 }
 0xc84   :  { %v758_v20 = vpop.permute.xlu0 %757 }
 0xc85   :  { %v760_v23 = vmul.f32 %v1800_v19, %v758_v20  ;;  %v782_v24 = vpop.permute.xlu1 %781 }
 0xc86   :  { %v784_v26 = vmul.f32 %v1802_v22, %v782_v24 }
 0xc87   :  { %762 = vrot.lane.b32.xlu0 %v760_v23, %s1920_s2 }
 0xc88   :  { %786 = vrot.lane.b32.xlu1 %v784_v26, %s1920_s2 }
 0xcf9   :  { %v763_v28 = vpop.permute.xlu0 %762 }
 0xcfa   :  { %v765_v31 = vadd.f32 %v763_v28, %v755_v27  ;;  %v787_v32 = vpop.permute.xlu1 %786 }
 0xcfb   :  { %v789_v34 = vadd.f32 %v787_v32, %v779_v30 }
 0xcfc   :  { %1803 = vtanh.f32 %v765_v31 }
 0xcfd   :  { %1805 = vtanh.f32 %v789_v34 }
 0xd06   :  { %v1804_v35 = vpop.eup %1803 }
 0xd07   :  { %v1806_v37 = vpop.eup %1805  ;;  %768 = vrot.lane.b32.xlu0 %v1804_v35, %s1919_s1 }
 0xd08   :  { %792 = vrot.lane.b32.xlu1 %v1806_v37, %s1919_s1 }
 0xd79   :  { %v769_v56 = vpop.permute.xlu0 %768 }
 0xd7a   :  { %v771_v21 = vmul.f32 %v1800_v19, %v769_v56  ;;  %v793_v38 = vpop.permute.xlu1 %792  ;;  %v211_v19 = vadd.f32 %v2012_v8, %v2099_v61 }
 0xd7b   :  { %v795_v39 = vmul.f32 %v1802_v22, %v793_v38 }
 0xd7c   :  { %797 = vrot.lane.b32.xlu0 %v771_v21, %s1920_s2 }
 0xd7d   :  { %801 = vrot.lane.b32.xlu1 %v795_v39, %s1919_s1 }
 0xdee   :  { %v798_v41 = vpop.permute.xlu0 %797 }
 0xdef   :  { %v802_v42 = vpop.permute.xlu1 %801 }
 0xdf0   :  { %v804_v43 = vsel %vm89_vm0, %v798_v41, %v802_v42 }
 0xdf1   :  { %1443 = vmatmul.mubr.msk.f32.vlgmr.msra.gmra.mrb[2].mxu1 %vm264_vm1, %v804_v43 }
 0xdf2   :  { %1674 = vmatpush1.bf16.msra.mxu1 %v2034_v29  ;;  %1142 = vmatprep.mubr.f32.mxu1 %v1921_v53 }
 0xdf3   :  { %1676 = vmatprep.subr.bf16.mxu1 %v2039_v33 }
 0xdf6   :  { %1678 = vmatpush1.bf16.msra.mxu1 %v2045_v36 }
 0xdf7   :  { %1680 = vmatprep.subr.bf16.mxu1 %v2052_v40 }
 0xdfa   :  { %1682 = vmatpush1.bf16.msra.mxu1 %v2062_v46 }
 0xdfb   :  { %1684 = vmatprep.subr.bf16.mxu1 %v2069_v48 }
 0xdfe   :  { %1686 = vmatpush1.bf16.msra.mxu1 %v2075_v52 }
 0xec4   :  { %v874_v45 = vpop.f32.mrb[2].mxu1 }
 0xec5   :  { %v881_v47 = vadd.f32 %v874_v45, %v206_v44  ;;  %v876_v29 = vpop.f32.mrb[3].mxu1 }
 0xec6   :  { %v882_v49 = vadd.f32 %v2117_v1, %v876_v29 }
 0xec7   :  { %1807 = vtanh.f32 %v881_v47  ;;  %v1444_v46 = vmul.f32 -1.442695, %v881_v47 }
 0xec8   :  { %1809 = vtanh.f32 %v882_v49  ;;  %v1445_v51 = vmul.f32 -1.442695, %v882_v49 }
 0xec9   :  { %1811 = vpow2.f32 %v1444_v46 }
 0xeca   :  { %1813 = vpow2.f32 %v1445_v51 }
 0xed1   :  { %v1808_v50 = vpop.eup %1807 }
 0xed2   :  { %v1810_v36 = vpop.eup %1809  ;;  %892 = vrot.lane.b32.xlu0 %v1808_v50, %s1919_s1 }
 0xed3   :  { %916 = vrot.lane.b32.xlu1 %v1810_v36, %s1919_s1  ;;  %v1812_v52 = vpop.eup %1811 }
 0xed4   :  { %v1814_v54 = vpop.eup %1813  ;;  %v886_v58 = vadd.f32 1.0, %v1812_v52 }
 0xed5   :  { %v910_v55 = vadd.f32 1.0, %v1814_v54 }
 0xed6   :  { %1815 = vrcp.f32 %v886_v58 }
 0xed7   :  { %1817 = vrcp.f32 %v910_v55  ;;  %v216_v55 = vadd.f32 %v2097_v60, %v2012_v8 }
 0xee0   :  { %v1816_v57 = vpop.eup %1815 }
 0xee1   :  { %v1818_v63 = vpop.eup %1817  ;;  %v890_v4 = vmul.f32 %v1816_v57, %v765_v31 }
 0xee2   :  { %v914_v6 = vmul.f32 %v1818_v63, %v789_v34 }
 0xf44   :  { %v893_v62 = vpop.permute.xlu0 %892 }
 0xf45   :  { %v895_v0 = vmul.f32 %v1816_v57, %v893_v62  ;;  %v917_v2 = vpop.permute.xlu1 %916 }
 0xf46   :  { %v919_v3 = vmul.f32 %v1818_v63, %v917_v2 }
 0xf47   :  { %897 = vrot.lane.b32.xlu0 %v895_v0, %s1920_s2 }
 0xf48   :  { %921 = vrot.lane.b32.xlu1 %v919_v3, %s1920_s2 }
 0xfb9   :  { %v898_v5 = vpop.permute.xlu0 %897 }
 0xfba   :  { %v900_v7 = vadd.f32 %v898_v5, %v890_v4  ;;  %v922_v10 = vpop.permute.xlu1 %921 }
 0xfbb   :  { %v924_v9 = vadd.f32 %v922_v10, %v914_v6 }
 0xfbc   :  { %1819 = vtanh.f32 %v900_v7 }
 0xfbd   :  { %1821 = vtanh.f32 %v924_v9 }
 0xfc6   :  { %v1820_v11 = vpop.eup %1819 }
 0xfc7   :  { %v1822_v12 = vpop.eup %1821  ;;  %903 = vrot.lane.b32.xlu0 %v1820_v11, %s1919_s1 }
 0xfc8   :  { %927 = vrot.lane.b32.xlu1 %v1822_v12, %s1919_s1 }
0x1039   :  { %v904_v13 = vpop.permute.xlu0 %903 }
0x103a   :  { %v906_v14 = vmul.f32 %v1816_v57, %v904_v13  ;;  %v928_v15 = vpop.permute.xlu1 %927 }
0x103b   :  { %v930_v16 = vmul.f32 %v1818_v63, %v928_v15 }
0x103c   :  { %932 = vrot.lane.b32.xlu0 %v906_v14, %s1920_s2 }
0x103d   :  { %936 = vrot.lane.b32.xlu1 %v930_v16, %s1919_s1 }
0x10ae   :  { %v933_v17 = vpop.permute.xlu0 %932 }
0x10af   :  { %v937_v59 = vpop.permute.xlu1 %936 }
0x10b0   :  { %v939_v18 = vsel %vm89_vm0, %v933_v17, %v937_v59 }
0x10b1   :  { %1446 = vmatmul.mubr.msk.f32.vlgmr.msra.gmra.mrb[14].mxu0 %vm264_vm1, %v939_v18 }
0x10b2   :  { %1529 = vmatprep.mubr.msk.f32.mxu0 %vm1923_vm2, %v1921_v53 }
0x1184   :  { %v1009_v20 = vpop.f32.mrb[14].mxu0 }
0x1185   :  { %v1016_v22 = vadd.f32 %v1009_v20, %v211_v19  ;;  %v1011_v23 = vpop.f32.mrb[15].mxu0  ;;  %v1922_v20 = vmov 0.0|0.0  }
0x1186   :  { %v1017_v24 = vadd.f32 %v2117_v1, %v1011_v23  ;;  %1687 = vmatprep.subr.bf16.mxu0 %v1922_v20  ;;  %1699 = vmatprep.subr.bf16.mxu1 %v1922_v20 }
0x1187   :  { %1823 = vtanh.f32 %v1016_v22  ;;  %v1447_v28 = vmul.f32 -1.442695, %v1016_v22  ;;  %1689 = vmatpush3.bf16.msra.mxu0 %v2026_v25 }
0x1188   :  { %1825 = vtanh.f32 %v1017_v24  ;;  %v1448_v30 = vmul.f32 -1.442695, %v1017_v24  ;;  %1690 = vmatprep.subr.bf16.mxu0 %v1922_v20 }
0x1189   :  { %1827 = vpow2.f32 %v1447_v28 }
0x118a   :  { %1829 = vpow2.f32 %v1448_v30 }
0x118b   :  { %1692 = vmatpush3.bf16.msra.mxu0 %v2039_v33 }
0x118c   :  { %1693 = vmatprep.subr.bf16.mxu0 %v1922_v20 }
0x118f   :  { %1695 = vmatpush3.bf16.msra.mxu0 %v2052_v40 }
0x1190   :  { %1696 = vmatprep.subr.bf16.mxu0 %v1922_v20 }
0x1191   :  { %v1824_v26 = vpop.eup %1823 }
0x1192   :  { %v1826_v27 = vpop.eup %1825  ;;  %1027 = vrot.lane.b32.xlu0 %v1824_v26, %s1919_s1 }
0x1193   :  { %1051 = vrot.lane.b32.xlu1 %v1826_v27, %s1919_s1  ;;  %v1828_v31 = vpop.eup %1827  ;;  %1698 = vmatpush3.bf16.msra.mxu0 %v2069_v48 }
0x1194   :  { %v1830_v32 = vpop.eup %1829  ;;  %v1021_v61 = vadd.f32 1.0, %v1828_v31 }
0x1195   :  { %v1045_v34 = vadd.f32 1.0, %v1830_v32 }
0x1196   :  { %1831 = vrcp.f32 %v1021_v61 }
0x1197   :  { %1833 = vrcp.f32 %v1045_v34 }
0x11a0   :  { %v1832_v35 = vpop.eup %1831 }
0x11a1   :  { %v1834_v56 = vpop.eup %1833  ;;  %v1025_v41 = vmul.f32 %v1832_v35, %v900_v7 }
0x11a2   :  { %v1049_v43 = vmul.f32 %v1834_v56, %v924_v9 }
0x1204   :  { %v1028_v37 = vpop.permute.xlu0 %1027 }
0x1205   :  { %v1030_v21 = vmul.f32 %v1832_v35, %v1028_v37  ;;  %v1052_v38 = vpop.permute.xlu1 %1051 }
0x1206   :  { %v1054_v39 = vmul.f32 %v1834_v56, %v1052_v38 }
0x1207   :  { %1032 = vrot.lane.b32.xlu0 %v1030_v21, %s1920_s2 }
0x1208   :  { %1056 = vrot.lane.b32.xlu1 %v1054_v39, %s1920_s2 }
0x1279   :  { %v1033_v42 = vpop.permute.xlu0 %1032 }
0x127a   :  { %v1035_v44 = vadd.f32 %v1033_v42, %v1025_v41  ;;  %v1057_v45 = vpop.permute.xlu1 %1056  ;;  %v1320_v41 = vld [vmem:[#allocation5 + $0x8] sm:$0xff]  ;;  %v1321_v42 = vld [vmem:[#allocation5 + $0x10] sm:$0xff] }
0x127b   :  { %v1059_v47 = vadd.f32 %v1057_v45, %v1049_v43 }
0x127c   :  { %1835 = vtanh.f32 %v1035_v44 }
0x127d   :  { %1837 = vtanh.f32 %v1059_v47 }
0x1286   :  { %v1836_v29 = vpop.eup %1835 }
0x1287   :  { %v1838_v49 = vpop.eup %1837  ;;  %1038 = vrot.lane.b32.xlu0 %v1836_v29, %s1919_s1  ;;  %v1324_v29 = vld [vmem:[#allocation5 + $0x28] sm:$0xff] }
0x1288   :  { %1062 = vrot.lane.b32.xlu1 %v1838_v49, %s1919_s1 }
0x12f9   :  { %v1039_v50 = vpop.permute.xlu0 %1038 }
0x12fa   :  { %v1041_v36 = vmul.f32 %v1832_v35, %v1039_v50  ;;  %v1063_v46 = vpop.permute.xlu1 %1062  ;;  %v1325_v50 = vld [vmem:[#allocation5 + $0x30] sm:$0xff] }
0x12fb   :  { %v1065_v51 = vmul.f32 %v1834_v56, %v1063_v46 }
0x12fc   :  { %1067 = vrot.lane.b32.xlu0 %v1041_v36, %s1920_s2  ;;  %v1326_v36 = vld [vmem:[#allocation5 + $0x38] sm:$0xff] }
0x12fd   :  { %1071 = vrot.lane.b32.xlu1 %v1065_v51, %s1919_s1  ;;  %v1709_v51 = vpack.c.bf16 %v1326_v36, %v1325_v50 }
0x136e   :  { %v1068_v52 = vpop.permute.xlu0 %1067 }
0x136f   :  { %v1072_v54 = vpop.permute.xlu1 %1071 }
0x1370   :  { %v1074_v58 = vsel %vm89_vm0, %v1068_v52, %v1072_v54  ;;  %v1327_v52 = vld [vmem:[#allocation5 + $0x40] sm:$0xff]  ;;  %v1328_v54 = vld [vmem:[#allocation5 + $0x48] sm:$0xff] }
0x1371   :  { %1449 = vmatmul.mubr.msk.f32.vlgmr.msra.gmra.mrb[4].mxu1 %vm264_vm1, %v1074_v58  ;;  %v1712_v58 = vpack.c.bf16 %v1328_v54, %v1327_v52 }
0x1372   :  { %1564 = vmatprep.mubr.msk.f32.mxu1 %vm1923_vm2, %v1921_v53 }
0x1444   :  { %v1144_v57 = vpop.f32.mrb[4].mxu1 }
0x1445   :  { %v1151_v62 = vadd.f32 %v1144_v57, %v216_v55  ;;  %v1146_v63 = vpop.f32.mrb[5].mxu1  ;;  %v1329_v55 = vld [vmem:[#allocation5 + $0x50] sm:$0xff]  ;;  %v1330_v57 = vld [vmem:[#allocation5 + $0x58] sm:$0xff] }
0x1446   :  { %v1152_v0 = vadd.f32 %v2117_v1, %v1146_v63  ;;  %v1331_v63 = vld [vmem:[#allocation5 + $0x60] sm:$0xff] }
0x1447   :  { %1839 = vtanh.f32 %v1151_v62  ;;  %v1450_v4 = vmul.f32 -1.442695, %v1151_v62  ;;  %v1715_v62 = vpack.c.bf16 %v1330_v57, %v1329_v55 }
0x1448   :  { %1841 = vtanh.f32 %v1152_v0  ;;  %v1451_v5 = vmul.f32 -1.442695, %v1152_v0  ;;  %v1332_v0 = vld [vmem:[#allocation5 + $0x68] sm:$0xff] }
0x1449   :  { %1843 = vpow2.f32 %v1450_v4  ;;  %v1334_v4 = vld [vmem:[#allocation5 + $0x78] sm:$0xff] }
0x144a   :  { %1845 = vpow2.f32 %v1451_v5 }
0x1451   :  { %v1840_v2 = vpop.eup %1839 }
0x1452   :  { %v1842_v3 = vpop.eup %1841  ;;  %1162 = vrot.lane.b32.xlu0 %v1840_v2, %s1919_s1  ;;  %v1718_v2 = vpack.c.bf16 %v1332_v0, %v1331_v63 }
0x1453   :  { %1186 = vrot.lane.b32.xlu1 %v1842_v3, %s1919_s1  ;;  %v1844_v6 = vpop.eup %1843  ;;  %v1333_v3 = vld [vmem:[#allocation5 + $0x70] sm:$0xff] }
0x1454   :  { %v1846_v7 = vpop.eup %1845  ;;  %v1156_v8 = vadd.f32 1.0, %v1844_v6  ;;  %v1721_v5 = vpack.c.bf16 %v1334_v4, %v1333_v3 }
0x1455   :  { %v1180_v60 = vadd.f32 1.0, %v1846_v7 }
0x1456   :  { %1847 = vrcp.f32 %v1156_v8 }
0x1457   :  { %1849 = vrcp.f32 %v1180_v60 }
0x1460   :  { %v1848_v10 = vpop.eup %1847 }
0x1461   :  { %v1850_v11 = vpop.eup %1849  ;;  %v1160_v15 = vmul.f32 %v1848_v10, %v1035_v44  ;;  %v1322_v44 = vld [vmem:[#allocation5 + $0x18] sm:$0xff] }
0x1462   :  { %v1184_v17 = vmul.f32 %v1850_v11, %v1059_v47  ;;  %v1703_v45 = vpack.c.bf16 %v1322_v44, %v1321_v42  ;;  %v1323_v47 = vld [vmem:[#allocation5 + $0x20] sm:$0xff] }
0x1463   :  { %v1706_v49 = vpack.c.bf16 %v1324_v29, %v1323_v47 }
0x14c4   :  { %v1163_v9 = vpop.permute.xlu0 %1162 }
0x14c5   :  { %v1165_v12 = vmul.f32 %v1848_v10, %v1163_v9  ;;  %v1187_v13 = vpop.permute.xlu1 %1186 }
0x14c6   :  { %v1189_v14 = vmul.f32 %v1850_v11, %v1187_v13 }
0x14c7   :  { %1167 = vrot.lane.b32.xlu0 %v1165_v12, %s1920_s2  ;;  %v1454_v12 = vld [vmem:[%s2288_s6] ss:$0 sm:$0xff] }
0x14c8   :  { %1191 = vrot.lane.b32.xlu1 %v1189_v14, %s1920_s2 }
0x1539   :  { %v1168_v16 = vpop.permute.xlu0 %1167 }
0x153a   :  { %v2237_v59 = vadd.f32 %v1168_v16, %v1160_v15  ;;  %v1192_v18 = vpop.permute.xlu1 %1191 }
0x153b   :  { %v1194_v19 = vadd.f32 %v1192_v18, %v1184_v17 }
0x153c   :  { %1851 = vtanh.f32 %v2237_v59 }
0x153d   :  { %1853 = vtanh.f32 %v1194_v19 }
0x1546   :  { %v1852_v22 = vpop.eup %1851 }
0x1547   :  { %v1854_v23 = vpop.eup %1853  ;;  %1173 = vrot.lane.b32.xlu0 %v1852_v22, %s1919_s1 }
0x1548   :  { %1197 = vrot.lane.b32.xlu1 %v1854_v23, %s1919_s1 }
0x15b9   :  { %v1174_v25 = vpop.permute.xlu0 %1173 }
0x15ba   :  { %v1176_v33 = vmul.f32 %v1848_v10, %v1174_v25  ;;  %v1198_v24 = vpop.permute.xlu1 %1197 }
0x15bb   :  { %v1200_v26 = vmul.f32 %v1850_v11, %v1198_v24 }
0x15bc   :  { %1202 = vrot.lane.b32.xlu0 %v1176_v33, %s1920_s2 }
0x15bd   :  { %1206 = vrot.lane.b32.xlu1 %v1200_v26, %s1919_s1 }
0x162e   :  { %v2255_v40 = vpop.permute.xlu0 %1202 }
0x162f   :  { %v1207_v27 = vpop.permute.xlu1 %1206  ;;  %v1315_v8 = vsel %vm89_vm0, %v2255_v40, %v2237_v59 }
0x1630   :  { %v1209_v28 = vsel %vm89_vm0, %v2255_v40, %v1207_v27 }
0x1631   :  { %1530 = vmatmul.mubr.msk.f32.vlgmr.msra.gmra.mrb[16].mxu0 %vm264_vm1, %v1209_v28 }
0x1704   :  { %v1279_v48 = vpop.f32.mrb[16].mxu0 }
0x1705   :  { %v1280_v30 = vadd.f32 %v2117_v1, %v1279_v48  ;;  %v1531_v53 = vpop.f32.mrb[17].mxu0  ;;  %v1319_v1 = vld [vmem:[#allocation5] sm:$0xff] }
0x1706   :  { %v1700_v43 = vpack.c.bf16 %v1320_v41, %v1319_v1 }
0x1707   :  { %1855 = vtanh.f32 %v1280_v30  ;;  %v1453_v32 = vmul.f32 -1.442695, %v1280_v30 }
0x1708   :  { %1701 = vmatpush3.bf16.msra.mxu1 %v1700_v43 }
0x1709   :  { %1857 = vpow2.f32 %v1453_v32  ;;  %1702 = vmatprep.subr.bf16.mxu1 %v1922_v20 }
0x170c   :  { %1704 = vmatpush3.bf16.msra.mxu1 %v1703_v45 }
0x170d   :  { %1705 = vmatprep.subr.bf16.mxu1 %v1922_v20 }
0x1710   :  { %1707 = vmatpush3.bf16.msra.mxu1 %v1706_v49 }
0x1711   :  { %v1856_v31 = vpop.eup %1855  ;;  %1708 = vmatprep.subr.bf16.mxu1 %v1922_v20 }
0x1712   :  { %1292 = vrot.lane.b32.xlu0 %v1856_v31, %s1919_s1 }
0x1713   :  { %v1858_v61 = vpop.eup %1857 }
0x1714   :  { %v1286_v34 = vadd.f32 1.0, %v1858_v61  ;;  %1710 = vmatpush3.bf16.msra.mxu1 %v1709_v51 }
0x1715   :  { %1711 = vmatprep.subr.bf16.mxu1 %v1922_v20 }
0x1716   :  { %1859 = vrcp.f32 %v1286_v34 }
0x1718   :  { %1713 = vmatpush3.bf16.msra.mxu1 %v1712_v58 }
0x1719   :  { %1714 = vmatprep.subr.bf16.mxu1 %v1922_v20 }
0x171c   :  { %1716 = vmatpush3.bf16.msra.mxu1 %v1715_v62 }
0x171d   :  { %1717 = vmatprep.subr.bf16.mxu1 %v1922_v20 }
0x1720   :  { %v1860_v35 = vpop.eup %1859  ;;  %1719 = vmatpush3.bf16.msra.mxu1 %v1718_v2 }
0x1721   :  { %v1290_v21 = vmul.f32 %v1860_v35, %v1194_v19  ;;  %1720 = vmatprep.subr.bf16.mxu1 %v1922_v20 }
0x1724   :  { %1722 = vmatpush3.bf16.msra.mxu1 %v1721_v5 }
0x1784   :  { %v1293_v37 = vpop.permute.xlu0 %1292 }
0x1785   :  { %v1295_v56 = vmul.f32 %v1860_v35, %v1293_v37 }
0x1787   :  { %1297 = vrot.lane.b32.xlu1 %v1295_v56, %s1920_s2 }
0x17f9   :  { %v1298_v38 = vpop.permute.xlu1 %1297 }
0x17fa   :  { %v1300_v39 = vadd.f32 %v1298_v38, %v1290_v21 }
0x17fc   :  { %1861 = vtanh.f32 %v1300_v39 }
0x1806   :  { %v1862_v46 = vpop.eup %1861 }
0x1807   :  { %1303 = vrot.lane.b32.xlu0 %v1862_v46, %s1919_s1 }
0x180b   :  { %1312 = vrot.lane.b32.xlu0 %v1300_v39, %s1919_s1 }
0x1879   :  { %v1304_v6 = vpop.permute.xlu0 %1303 }
0x187a   :  { %v1306_v7 = vmul.f32 %v1860_v35, %v1304_v6 }
0x187c   :  { %1308 = vrot.lane.b32.xlu1 %v1306_v7, %s1924_s4 }
0x187d   :  { %v1313_v10 = vpop.permute.xlu0 %1312 }
0x18ee   :  { %v1309_v60 = vpop.permute.xlu1 %1308 }
0x18ef   :  { %v1316_v9 = vsel %vm264_vm1, %v1315_v8, %v1309_v60 }
0x18f0   :  { %v1318_v11 = vsel %vm1317_vm3, %v1316_v9, %v1313_v10 }
0x18f1   :  { %1565 = vmatmul.mubr.f32.vlgmr.msra.gmra.mrb[6].mxu1 %v1318_v11 }
0x19c4   :  { %v1408_v13 = vpop.f32.mrb[6].mxu1 }
0x19c5   :  { %v1409_v14 = vadd.f32 %v1454_v12, %v1408_v13  ;;  %v1566_v15 = vpop.f32.mrb[7].mxu1 }
0x19c7   :  { %1863 = vtanh.f32 %v1409_v14 }
0x19d1   :  { %v1864_v16 = vpop.eup %1863 }
0x19d2   :  { %1413 = vst [vmem:[%s2289_s7] sm:$0xff] %v1864_v16 }
0x19d3   :  { %1418 = vsyncpa [#allocation4], 1 }
0x19d4   :  { %1419 = vsyncpa [#allocation6], 1 }

</bundles_post_ra>
